<compile_context>
chip_gen: v7x
topology: tpu7x:2x2x1
jax: 0.10.0
libtpu: 0.0.40
codegen_flags: <defaults>
</compile_context>

<pallas_src>
import jax
import jax.numpy as jnp
from jax import lax
from jax.experimental import pallas as pl
from jax.experimental.pallas import tpu as pltpu


# ----------------------------- Pallas kernel ---------------------------------
def _lstm_m2m_kernel(
    embed_ref,                    # (TB, T, D_in)   batch-tile of the input
    wi2h_ref, bi2h_ref,           # (D_in, H), (1, H)
    wih1_ref, whh1_ref, b1_ref,   # (H, 4H), (H, 4H), (1, 4H)
    wih2_ref, whh2_ref, b2_ref,   # (H, 4H), (H, 4H), (1, 4H)
    wh2o_ref, bh2o_ref,           # (H, D_in), (1, D_in)
    out_ref,                      # (TB, T, D_in)
    g1_scratch,                   # (T, TB, 4H) VMEM: time-major layer-1 input gates
    h2_scratch,                   # (T, TB, H)  VMEM: time-major layer-2 hidden states
):
    TB, T, D = embed_ref.shape
    H = whh1_ref.shape[0]

    # ---- batched, time-independent prologue (M = TB*T rows) -----------------
    x = embed_ref[...].reshape(TB * T, D)
    xh = jnp.maximum(
        jnp.dot(x, wi2h_ref[...], preferred_element_type=jnp.float32)
        + bi2h_ref[...],
        0.0,
    )                                                            # (TB*T, H)
    # Layer-1 input gates (x @ Wih1 + b1) for every timestep at once.
    g1_bm = (
        jnp.dot(xh, wih1_ref[...], preferred_element_type=jnp.float32)
        + b1_ref[...]
    ).reshape(TB, T, 4 * H)                                      # batch-major

    # One-time relayout to a time-major VMEM scratch (stores use idle vst
    # slots) so each recurrence step reads one contiguous (TB, 4H) slab.
    for t in range(T):
        g1_scratch[t] = g1_bm[:, t, :]

    # Hoisted: JAX does not CSE broadcast_in_dim inside the loop.
    b2b = jnp.broadcast_to(b2_ref[...], (TB, 4 * H))

    def gate_act(gates, c_prev):
        # One full-width sigmoid pass; tanh only where it is consumed.
        sg = jax.nn.sigmoid(gates)
        i = sg[:, 0 * H:1 * H]          # PyTorch gate order: i, f, g, o
        f = sg[:, 1 * H:2 * H]
        o = sg[:, 3 * H:4 * H]
        g = jnp.tanh(gates[:, 2 * H:3 * H])
        c_new = f * c_prev + i * g
        h_new = o * jnp.tanh(c_new)
        return h_new, c_new

    def step(t, carry):
        h1, c1, h2, c2 = carry
        # Layer-2 recurrent matmul first: it depends only on the previous h2,
        # so it overlaps layer-1's matmul -> sigmoid/tanh critical chain.
        rec2 = jnp.dot(h2, whh2_ref[...], preferred_element_type=jnp.float32)

        # Layer 1: input-gate part precomputed; only the recurrent matmul here.
        gates1 = g1_scratch[t] + jnp.dot(
            h1, whh1_ref[...], preferred_element_type=jnp.float32
        )
        h1, c1 = gate_act(gates1, c1)

        # Layer 2.
        gates2 = rec2 + jnp.dot(
            h1, wih2_ref[...], preferred_element_type=jnp.float32
        ) + b2b
        h2, c2 = gate_act(gates2, c2)

        h2_scratch[t] = h2
        return h1, c1, h2, c2

    zeros = jnp.zeros((TB, H), jnp.float32)
    lax.fori_loop(0, T, step, (zeros, zeros, zeros, zeros), unroll=True)

    # ---- batched epilogue: h2o + relu over all T*TB rows ---------------------
    h2_all = h2_scratch[...].reshape(T * TB, H)                  # time-major rows
    y = jnp.maximum(
        jnp.dot(h2_all, wh2o_ref[...], preferred_element_type=jnp.float32)
        + bh2o_ref[...],
        0.0,
    ).reshape(T, TB, D)
    # T strided (TB, D) stores re-interleave to the batch-first output layout
    # (vst slots are otherwise idle at this point).
    for t in range(T):
        out_ref[:, t, :] = y[t]


# ------------------------------- wrapper --------------------------------------
@jax.jit
def lstm_many2many_forward(embed, params):
    """embed: (B, T, D_in) float32. Returns (embed, output) like the torch module."""
    B, T, D_in = embed.shape
    H = params["wi2h"].shape[1]

    # Batch tile per grid program: split into two "parallel" programs when the
    # batch is big enough (keeping the sublane dim a multiple of 8) so v7x can
    # run the tiles on its two TensorCores. At B=8 it is a single program.
    TB = B // 2 if (B >= 16 and B % 2 == 0 and (B // 2) % 8 == 0) else B

    full = lambda r, c: pl.BlockSpec((r, c), lambda b: (0, 0))

    output = pl.pallas_call(
        _lstm_m2m_kernel,
        out_shape=jax.ShapeDtypeStruct((B, T, D_in), jnp.float32),
        grid_spec=pltpu.PrefetchScalarGridSpec(
            num_scalar_prefetch=0,
            grid=(B // TB,),
            in_specs=[
                pl.BlockSpec((TB, T, D_in), lambda b: (b, 0, 0)),   # embed tile
                full(D_in, H), full(1, H),                          # i2h
                full(H, 4 * H), full(H, 4 * H), full(1, 4 * H),     # lstm layer 1
                full(H, 4 * H), full(H, 4 * H), full(1, 4 * H),     # lstm layer 2
                full(H, D_in), full(1, D_in),                       # h2o
            ],
            out_specs=pl.BlockSpec((TB, T, D_in), lambda b: (b, 0, 0)),
            scratch_shapes=[
                pltpu.VMEM((T, TB, 4 * H), jnp.float32),   # time-major g1
                pltpu.VMEM((T, TB, H), jnp.float32),       # time-major h2
            ],
        ),
        compiler_params=pltpu.CompilerParams(
            # Batch tiles are independent (the only serial dependence is time,
            # handled inside the kernel body).
            dimension_semantics=("parallel",),
            vmem_limit_bytes=32 * 1024 * 1024,
        ),
    )(
        embed,
        params["wi2h"], params["bi2h"],
        params["wih1"], params["whh1"], params["b1"],
        params["wih2"], params["whh2"], params["b2"],
        params["wh2o"], params["bh2o"],
    )
    return embed, output


# ------------------------- pure-JAX reference ---------------------------------
def _reference(embed, params):
    x = jax.nn.relu(embed @ params["wi2h"] + params["bi2h"])  # (B, T, H)
    xs = jnp.transpose(x, (1, 0, 2))                          # (T, B, H)

    def run_layer(xs, wih, whh, b):
        B = xs.shape[1]
        H = whh.shape[0]

        def step(carry, xt):
            h, c = carry
            gates = xt @ wih + h @ whh + b
            i, f, g, o = jnp.split(gates, 4, axis=-1)
            i, f, o = jax.nn.sigmoid(i), jax.nn.sigmoid(f), jax.nn.sigmoid(o)
            g = jnp.tanh(g)
            c = f * c + i * g
            h = o * jnp.tanh(c)
            return (h, c), h

        init = (jnp.zeros((B, H), jnp.float32), jnp.zeros((B, H), jnp.float32))
        _, hs = lax.scan(step, init, xs)
        return hs

    h1 = run_layer(xs, params["wih1"], params["whh1"], params["b1"])
    h2 = run_layer(h1, params["wih2"], params["whh2"], params["b2"])
    out = jax.nn.relu(h2 @ params["wh2o"] + params["bh2o"])
    return jnp.transpose(out, (1, 0, 2))


# --------------------------------- params --------------------------------------
def _init_params(key, d_in, hidden):
    # NB: if importing a real PyTorch checkpoint, nn.Linear / nn.LSTM weights
    # must be transposed to (in, out) / (in, 4H) and b_ih + b_hh summed.
    ks = jax.random.split(key, 12)
    u = lambda k, shape, s: jax.random.uniform(k, shape, jnp.float32, -s, s)
    s_i = 1.0 / jnp.sqrt(d_in)
    s_h = 1.0 / jnp.sqrt(hidden)
    return {
        # i2h: Linear(D_in -> H)
        "wi2h": u(ks[0], (d_in, hidden), s_i),
        "bi2h": u(ks[1], (1, hidden), s_i),
        # LSTM layer 1 (pre-transposed; bias = b_ih + b_hh fused)
        "wih1": u(ks[2], (hidden, 4 * hidden), s_h),
        "whh1": u(ks[3], (hidden, 4 * hidden), s_h),
        "b1":   u(ks[4], (1, 4 * hidden), s_h),
        # LSTM layer 2
        "wih2": u(ks[5], (hidden, 4 * hidden), s_h),
        "whh2": u(ks[6], (hidden, 4 * hidden), s_h),
        "b2":   u(ks[7], (1, 4 * hidden), s_h),
        # h2o: Linear(H -> D_in)
        "wh2o": u(ks[8], (hidden, d_in), s_h),
        "bh2o": u(ks[9], (1, d_in), s_h),
    }


# ---------------------------------- main ----------------------------------------
if __name__ == "__main__":
    B, T, D_IN, H = 8, 8, 128, 32  # batch, seq, input_size, hidden_size (2 LSTM layers)

    key = jax.random.PRNGKey(0)
    k_emb, k_par = jax.random.split(key)
    embed = jax.random.normal(k_emb, (B, T, D_IN), dtype=jnp.float32)
    params = _init_params(k_par, D_IN, H)

    embed_out, output = lstm_many2many_forward(embed, params)
    embed_out = jax.block_until_ready(embed_out)
    output = jax.block_until_ready(output)

    ref = _reference(embed, params)
    assert output.shape == (B, T, D_IN)
    assert jnp.allclose(embed_out, embed)
    assert jnp.allclose(output, ref, atol=1e-5, rtol=1e-5), float(
        jnp.max(jnp.abs(output - ref))
    )
    print("KERNEL_OK")
</pallas_src>

<mosaic_0001>
module attributes {stable_mosaic.version = 11 : i64} {
  func.func @_lstm_m2m_kernel(%arg0: i32, %arg1: memref<8x8x128xf32, #tpu.memory_space<vmem>>, %arg2: memref<128x32xf32, #tpu.memory_space<vmem>>, %arg3: memref<1x32xf32, #tpu.memory_space<vmem>>, %arg4: memref<32x128xf32, #tpu.memory_space<vmem>>, %arg5: memref<32x128xf32, #tpu.memory_space<vmem>>, %arg6: memref<1x128xf32, #tpu.memory_space<vmem>>, %arg7: memref<32x128xf32, #tpu.memory_space<vmem>>, %arg8: memref<32x128xf32, #tpu.memory_space<vmem>>, %arg9: memref<1x128xf32, #tpu.memory_space<vmem>>, %arg10: memref<32x128xf32, #tpu.memory_space<vmem>>, %arg11: memref<1x128xf32, #tpu.memory_space<vmem>>, %arg12: memref<8x8x128xf32, #tpu.memory_space<vmem>>, %arg13: memref<8x8x128xf32, #tpu.memory_space<vmem>>, %arg14: memref<8x8x32xf32, #tpu.memory_space<vmem>>) attributes {dimension_semantics = [#tpu.dimension_semantics<parallel>], iteration_bounds = array<i64: 1>, scalar_prefetch = 0 : i64, scratch_operands = 2 : i64, tpu.core_type = #tpu.core_type<tc>, window_params = [{transform_indices = @transform_0, window_bounds = array<i64: 8, 8, 128>}, {pipeline_mode = #tpu.pipeline_mode<synchronous>, transform_indices = @transform_1, window_bounds = array<i64: 128, 32>}, {pipeline_mode = #tpu.pipeline_mode<synchronous>, transform_indices = @transform_2, window_bounds = array<i64: 1, 32>}, {pipeline_mode = #tpu.pipeline_mode<synchronous>, transform_indices = @transform_3, window_bounds = array<i64: 32, 128>}, {pipeline_mode = #tpu.pipeline_mode<synchronous>, transform_indices = @transform_4, window_bounds = array<i64: 32, 128>}, {pipeline_mode = #tpu.pipeline_mode<synchronous>, transform_indices = @transform_5, window_bounds = array<i64: 1, 128>}, {pipeline_mode = #tpu.pipeline_mode<synchronous>, transform_indices = @transform_6, window_bounds = array<i64: 32, 128>}, {pipeline_mode = #tpu.pipeline_mode<synchronous>, transform_indices = @transform_7, window_bounds = array<i64: 32, 128>}, {pipeline_mode = #tpu.pipeline_mode<synchronous>, transform_indices = @transform_8, window_bounds = array<i64: 1, 128>}, {pipeline_mode = #tpu.pipeline_mode<synchronous>, transform_indices = @transform_9, window_bounds = array<i64: 32, 128>}, {pipeline_mode = #tpu.pipeline_mode<synchronous>, transform_indices = @transform_10, window_bounds = array<i64: 1, 128>}, {transform_indices = @transform_11, window_bounds = array<i64: 8, 8, 128>}]} {
    %c0 = arith.constant 0 : index
    %c0_0 = arith.constant 0 : index
    %c0_1 = arith.constant 0 : index
    %0 = vector.load %arg1[%c0, %c0_0, %c0_1] : memref<8x8x128xf32, #tpu.memory_space<vmem>>, vector<8x8x128xf32>
    %1 = vector.shape_cast %0 : vector<8x8x128xf32> to vector<64x128xf32>
    %c0_2 = arith.constant 0 : index
    %c0_3 = arith.constant 0 : index
    %2 = vector.load %arg2[%c0_2, %c0_3] : memref<128x32xf32, #tpu.memory_space<vmem>>, vector<128x32xf32>
    %cst = arith.constant dense<0.000000e+00> : vector<64x32xf32>
    %3 = tpu.matmul %1, %2, %cst {dimension_numbers = #tpu.dot_dimension_numbers<[1], [0], [0], [1], [0, 0, 1, 1], [], []>} : vector<64x128xf32>, vector<128x32xf32>, vector<64x32xf32> -> vector<64x32xf32>
    %c0_4 = arith.constant 0 : index
    %c0_5 = arith.constant 0 : index
    %4 = vector.load %arg3[%c0_4, %c0_5] : memref<1x32xf32, #tpu.memory_space<vmem>>, vector<1x32xf32>
    %5 = vector.broadcast %4 : vector<1x32xf32> to vector<64x32xf32>
    %6 = arith.addf %3, %5 : vector<64x32xf32>
    %cst_6 = arith.constant 0.000000e+00 : f32
    %7 = vector.broadcast %cst_6 : f32 to vector<64x32xf32>
    %8 = arith.maximumf %6, %7 : vector<64x32xf32>
    %c0_7 = arith.constant 0 : index
    %c0_8 = arith.constant 0 : index
    %9 = vector.load %arg4[%c0_7, %c0_8] : memref<32x128xf32, #tpu.memory_space<vmem>>, vector<32x128xf32>
    %cst_9 = arith.constant dense<0.000000e+00> : vector<64x128xf32>
    %10 = tpu.matmul %8, %9, %cst_9 {dimension_numbers = #tpu.dot_dimension_numbers<[1], [0], [0], [1], [0, 0, 1, 1], [], []>} : vector<64x32xf32>, vector<32x128xf32>, vector<64x128xf32> -> vector<64x128xf32>
    %c0_10 = arith.constant 0 : index
    %c0_11 = arith.constant 0 : index
    %11 = vector.load %arg6[%c0_10, %c0_11] : memref<1x128xf32, #tpu.memory_space<vmem>>, vector<1x128xf32>
    %12 = vector.broadcast %11 : vector<1x128xf32> to vector<64x128xf32>
    %13 = arith.addf %10, %12 : vector<64x128xf32>
    %14 = vector.shape_cast %13 : vector<64x128xf32> to vector<8x8x128xf32>
    %15 = vector.extract_strided_slice %14 {offsets = [0, 0, 0], sizes = [8, 1, 128], strides = [1, 1, 1]} : vector<8x8x128xf32> to vector<8x1x128xf32>
    %16 = vector.shape_cast %15 : vector<8x1x128xf32> to vector<8x128xf32>
    %c0_12 = arith.constant 0 : index
    %c0_13 = arith.constant 0 : index
    %c0_14 = arith.constant 0 : index
    %17 = vector.load %arg13[%c0_12, %c0_13, %c0_14] : memref<8x8x128xf32, #tpu.memory_space<vmem>>, vector<1x8x128xf32>
    %18 = vector.shape_cast %17 : vector<1x8x128xf32> to vector<8x128xf32>
    %19 = vector.shape_cast %16 : vector<8x128xf32> to vector<1x8x128xf32>
    tpu.vector_store %arg13[%c0_12, %c0_13, %c0_14], %19 {strides = array<i32>} : memref<8x8x128xf32, #tpu.memory_space<vmem>>, vector<1x8x128xf32>,
    %20 = vector.extract_strided_slice %14 {offsets = [0, 1, 0], sizes = [8, 1, 128], strides = [1, 1, 1]} : vector<8x8x128xf32> to vector<8x1x128xf32>
    %21 = vector.shape_cast %20 : vector<8x1x128xf32> to vector<8x128xf32>
    %c1 = arith.constant 1 : index
    %c0_15 = arith.constant 0 : index
    %c0_16 = arith.constant 0 : index
    %22 = vector.load %arg13[%c1, %c0_15, %c0_16] : memref<8x8x128xf32, #tpu.memory_space<vmem>>, vector<1x8x128xf32>
    %23 = vector.shape_cast %22 : vector<1x8x128xf32> to vector<8x128xf32>
    %24 = vector.shape_cast %21 : vector<8x128xf32> to vector<1x8x128xf32>
    tpu.vector_store %arg13[%c1, %c0_15, %c0_16], %24 {strides = array<i32>} : memref<8x8x128xf32, #tpu.memory_space<vmem>>, vector<1x8x128xf32>,
    %25 = vector.extract_strided_slice %14 {offsets = [0, 2, 0], sizes = [8, 1, 128], strides = [1, 1, 1]} : vector<8x8x128xf32> to vector<8x1x128xf32>
    %26 = vector.shape_cast %25 : vector<8x1x128xf32> to vector<8x128xf32>
    %c2 = arith.constant 2 : index
    %c0_17 = arith.constant 0 : index
    %c0_18 = arith.constant 0 : index
    %27 = vector.load %arg13[%c2, %c0_17, %c0_18] : memref<8x8x128xf32, #tpu.memory_space<vmem>>, vector<1x8x128xf32>
    %28 = vector.shape_cast %27 : vector<1x8x128xf32> to vector<8x128xf32>
    %29 = vector.shape_cast %26 : vector<8x128xf32> to vector<1x8x128xf32>
    tpu.vector_store %arg13[%c2, %c0_17, %c0_18], %29 {strides = array<i32>} : memref<8x8x128xf32, #tpu.memory_space<vmem>>, vector<1x8x128xf32>,
    %30 = vector.extract_strided_slice %14 {offsets = [0, 3, 0], sizes = [8, 1, 128], strides = [1, 1, 1]} : vector<8x8x128xf32> to vector<8x1x128xf32>
    %31 = vector.shape_cast %30 : vector<8x1x128xf32> to vector<8x128xf32>
    %c3 = arith.constant 3 : index
    %c0_19 = arith.constant 0 : index
    %c0_20 = arith.constant 0 : index
    %32 = vector.load %arg13[%c3, %c0_19, %c0_20] : memref<8x8x128xf32, #tpu.memory_space<vmem>>, vector<1x8x128xf32>
    %33 = vector.shape_cast %32 : vector<1x8x128xf32> to vector<8x128xf32>
    %34 = vector.shape_cast %31 : vector<8x128xf32> to vector<1x8x128xf32>
    tpu.vector_store %arg13[%c3, %c0_19, %c0_20], %34 {strides = array<i32>} : memref<8x8x128xf32, #tpu.memory_space<vmem>>, vector<1x8x128xf32>,
    %35 = vector.extract_strided_slice %14 {offsets = [0, 4, 0], sizes = [8, 1, 128], strides = [1, 1, 1]} : vector<8x8x128xf32> to vector<8x1x128xf32>
    %36 = vector.shape_cast %35 : vector<8x1x128xf32> to vector<8x128xf32>
    %c4 = arith.constant 4 : index
    %c0_21 = arith.constant 0 : index
    %c0_22 = arith.constant 0 : index
    %37 = vector.load %arg13[%c4, %c0_21, %c0_22] : memref<8x8x128xf32, #tpu.memory_space<vmem>>, vector<1x8x128xf32>
    %38 = vector.shape_cast %37 : vector<1x8x128xf32> to vector<8x128xf32>
    %39 = vector.shape_cast %36 : vector<8x128xf32> to vector<1x8x128xf32>
    tpu.vector_store %arg13[%c4, %c0_21, %c0_22], %39 {strides = array<i32>} : memref<8x8x128xf32, #tpu.memory_space<vmem>>, vector<1x8x128xf32>,
    %40 = vector.extract_strided_slice %14 {offsets = [0, 5, 0], sizes = [8, 1, 128], strides = [1, 1, 1]} : vector<8x8x128xf32> to vector<8x1x128xf32>
    %41 = vector.shape_cast %40 : vector<8x1x128xf32> to vector<8x128xf32>
    %c5 = arith.constant 5 : index
    %c0_23 = arith.constant 0 : index
    %c0_24 = arith.constant 0 : index
    %42 = vector.load %arg13[%c5, %c0_23, %c0_24] : memref<8x8x128xf32, #tpu.memory_space<vmem>>, vector<1x8x128xf32>
    %43 = vector.shape_cast %42 : vector<1x8x128xf32> to vector<8x128xf32>
    %44 = vector.shape_cast %41 : vector<8x128xf32> to vector<1x8x128xf32>
    tpu.vector_store %arg13[%c5, %c0_23, %c0_24], %44 {strides = array<i32>} : memref<8x8x128xf32, #tpu.memory_space<vmem>>, vector<1x8x128xf32>,
    %45 = vector.extract_strided_slice %14 {offsets = [0, 6, 0], sizes = [8, 1, 128], strides = [1, 1, 1]} : vector<8x8x128xf32> to vector<8x1x128xf32>
    %46 = vector.shape_cast %45 : vector<8x1x128xf32> to vector<8x128xf32>
    %c6 = arith.constant 6 : index
    %c0_25 = arith.constant 0 : index
    %c0_26 = arith.constant 0 : index
    %47 = vector.load %arg13[%c6, %c0_25, %c0_26] : memref<8x8x128xf32, #tpu.memory_space<vmem>>, vector<1x8x128xf32>
    %48 = vector.shape_cast %47 : vector<1x8x128xf32> to vector<8x128xf32>
    %49 = vector.shape_cast %46 : vector<8x128xf32> to vector<1x8x128xf32>
    tpu.vector_store %arg13[%c6, %c0_25, %c0_26], %49 {strides = array<i32>} : memref<8x8x128xf32, #tpu.memory_space<vmem>>, vector<1x8x128xf32>,
    %50 = vector.extract_strided_slice %14 {offsets = [0, 7, 0], sizes = [8, 1, 128], strides = [1, 1, 1]} : vector<8x8x128xf32> to vector<8x1x128xf32>
    %51 = vector.shape_cast %50 : vector<8x1x128xf32> to vector<8x128xf32>
    %c7 = arith.constant 7 : index
    %c0_27 = arith.constant 0 : index
    %c0_28 = arith.constant 0 : index
    %52 = vector.load %arg13[%c7, %c0_27, %c0_28] : memref<8x8x128xf32, #tpu.memory_space<vmem>>, vector<1x8x128xf32>
    %53 = vector.shape_cast %52 : vector<1x8x128xf32> to vector<8x128xf32>
    %54 = vector.shape_cast %51 : vector<8x128xf32> to vector<1x8x128xf32>
    tpu.vector_store %arg13[%c7, %c0_27, %c0_28], %54 {strides = array<i32>} : memref<8x8x128xf32, #tpu.memory_space<vmem>>, vector<1x8x128xf32>,
    %c0_29 = arith.constant 0 : index
    %c0_30 = arith.constant 0 : index
    %55 = vector.load %arg9[%c0_29, %c0_30] : memref<1x128xf32, #tpu.memory_space<vmem>>, vector<1x128xf32>
    %56 = vector.shape_cast %55 : vector<1x128xf32> to vector<1x128xf32>
    %57 = vector.broadcast %56 : vector<1x128xf32> to vector<8x128xf32>
    %cst_31 = arith.constant 0.000000e+00 : f32
    %58 = vector.broadcast %cst_31 : f32 to vector<8x32xf32>
    %c0_i32 = arith.constant 0 : i32
    %c0_32 = arith.constant 0 : index
    %c0_33 = arith.constant 0 : index
    %59 = vector.load %arg8[%c0_32, %c0_33] : memref<32x128xf32, #tpu.memory_space<vmem>>, vector<32x128xf32>
    %cst_34 = arith.constant dense<0.000000e+00> : vector<8x128xf32>
    %60 = tpu.matmul %58, %59, %cst_34 {dimension_numbers = #tpu.dot_dimension_numbers<[1], [0], [0], [1], [0, 0, 1, 1], [], []>} : vector<8x32xf32>, vector<32x128xf32>, vector<8x128xf32> -> vector<8x128xf32>
    %61 = arith.index_cast %c0_i32 : i32 to index
    %c0_35 = arith.constant 0 : index
    %c0_36 = arith.constant 0 : index
    %62 = vector.load %arg13[%61, %c0_35, %c0_36] : memref<8x8x128xf32, #tpu.memory_space<vmem>>, vector<1x8x128xf32>
    %63 = vector.shape_cast %62 : vector<1x8x128xf32> to vector<8x128xf32>
    %c0_37 = arith.constant 0 : index
    %c0_38 = arith.constant 0 : index
    %64 = vector.load %arg5[%c0_37, %c0_38] : memref<32x128xf32, #tpu.memory_space<vmem>>, vector<32x128xf32>
    %cst_39 = arith.constant dense<0.000000e+00> : vector<8x128xf32>
    %65 = tpu.matmul %58, %64, %cst_39 {dimension_numbers = #tpu.dot_dimension_numbers<[1], [0], [0], [1], [0, 0, 1, 1], [], []>} : vector<8x32xf32>, vector<32x128xf32>, vector<8x128xf32> -> vector<8x128xf32>
    %66 = arith.addf %63, %65 : vector<8x128xf32>
    %67 = arith.negf %66 : vector<8x128xf32>
    %68 = math.exp %67 : vector<8x128xf32>
    %cst_40 = arith.constant 1.000000e+00 : f32
    %69 = vector.broadcast %cst_40 : f32 to vector<8x128xf32>
    %70 = arith.addf %69, %68 : vector<8x128xf32>
    %71 = arith.divf %69, %70 : vector<8x128xf32>
    %72 = vector.extract_strided_slice %71 {offsets = [0, 0], sizes = [8, 32], strides = [1, 1]} : vector<8x128xf32> to vector<8x32xf32>
    %73 = vector.extract_strided_slice %71 {offsets = [0, 32], sizes = [8, 32], strides = [1, 1]} : vector<8x128xf32> to vector<8x32xf32>
    %74 = vector.extract_strided_slice %71 {offsets = [0, 96], sizes = [8, 32], strides = [1, 1]} : vector<8x128xf32> to vector<8x32xf32>
    %75 = vector.extract_strided_slice %66 {offsets = [0, 64], sizes = [8, 32], strides = [1, 1]} : vector<8x128xf32> to vector<8x32xf32>
    %76 = math.tanh %75 : vector<8x32xf32>
    %77 = arith.mulf %73, %58 : vector<8x32xf32>
    %78 = arith.mulf %72, %76 : vector<8x32xf32>
    %79 = arith.addf %77, %78 : vector<8x32xf32>
    %80 = math.tanh %79 : vector<8x32xf32>
    %81 = arith.mulf %74, %80 : vector<8x32xf32>
    %c0_41 = arith.constant 0 : index
    %c0_42 = arith.constant 0 : index
    %82 = vector.load %arg7[%c0_41, %c0_42] : memref<32x128xf32, #tpu.memory_space<vmem>>, vector<32x128xf32>
    %cst_43 = arith.constant dense<0.000000e+00> : vector<8x128xf32>
    %83 = tpu.matmul %81, %82, %cst_43 {dimension_numbers = #tpu.dot_dimension_numbers<[1], [0], [0], [1], [0, 0, 1, 1], [], []>} : vector<8x32xf32>, vector<32x128xf32>, vector<8x128xf32> -> vector<8x128xf32>
    %84 = arith.addf %60, %83 : vector<8x128xf32>
    %85 = arith.addf %84, %57 : vector<8x128xf32>
    %86 = arith.negf %85 : vector<8x128xf32>
    %87 = math.exp %86 : vector<8x128xf32>
    %cst_44 = arith.constant 1.000000e+00 : f32
    %88 = vector.broadcast %cst_44 : f32 to vector<8x128xf32>
    %89 = arith.addf %88, %87 : vector<8x128xf32>
    %90 = arith.divf %88, %89 : vector<8x128xf32>
    %91 = vector.extract_strided_slice %90 {offsets = [0, 0], sizes = [8, 32], strides = [1, 1]} : vector<8x128xf32> to vector<8x32xf32>
    %92 = vector.extract_strided_slice %90 {offsets = [0, 32], sizes = [8, 32], strides = [1, 1]} : vector<8x128xf32> to vector<8x32xf32>
    %93 = vector.extract_strided_slice %90 {offsets = [0, 96], sizes = [8, 32], strides = [1, 1]} : vector<8x128xf32> to vector<8x32xf32>
    %94 = vector.extract_strided_slice %85 {offsets = [0, 64], sizes = [8, 32], strides = [1, 1]} : vector<8x128xf32> to vector<8x32xf32>
    %95 = math.tanh %94 : vector<8x32xf32>
    %96 = arith.mulf %92, %58 : vector<8x32xf32>
    %97 = arith.mulf %91, %95 : vector<8x32xf32>
    %98 = arith.addf %96, %97 : vector<8x32xf32>
    %99 = math.tanh %98 : vector<8x32xf32>
    %100 = arith.mulf %93, %99 : vector<8x32xf32>
    %101 = arith.index_cast %c0_i32 : i32 to index
    %c0_45 = arith.constant 0 : index
    %c0_46 = arith.constant 0 : index
    %102 = vector.load %arg14[%101, %c0_45, %c0_46] : memref<8x8x32xf32, #tpu.memory_space<vmem>>, vector<1x8x32xf32>
    %103 = vector.shape_cast %102 : vector<1x8x32xf32> to vector<8x32xf32>
    %104 = vector.shape_cast %100 : vector<8x32xf32> to vector<1x8x32xf32>
    tpu.vector_store %arg14[%101, %c0_45, %c0_46], %104 {strides = array<i32>} : memref<8x8x32xf32, #tpu.memory_space<vmem>>, vector<1x8x32xf32>,
    %c1_i32 = arith.constant 1 : i32
    %c0_47 = arith.constant 0 : index
    %c0_48 = arith.constant 0 : index
    %105 = vector.load %arg8[%c0_47, %c0_48] : memref<32x128xf32, #tpu.memory_space<vmem>>, vector<32x128xf32>
    %cst_49 = arith.constant dense<0.000000e+00> : vector<8x128xf32>
    %106 = tpu.matmul %100, %105, %cst_49 {dimension_numbers = #tpu.dot_dimension_numbers<[1], [0], [0], [1], [0, 0, 1, 1], [], []>} : vector<8x32xf32>, vector<32x128xf32>, vector<8x128xf32> -> vector<8x128xf32>
    %107 = arith.index_cast %c1_i32 : i32 to index
    %c0_50 = arith.constant 0 : index
    %c0_51 = arith.constant 0 : index
    %108 = vector.load %arg13[%107, %c0_50, %c0_51] : memref<8x8x128xf32, #tpu.memory_space<vmem>>, vector<1x8x128xf32>
    %109 = vector.shape_cast %108 : vector<1x8x128xf32> to vector<8x128xf32>
    %c0_52 = arith.constant 0 : index
    %c0_53 = arith.constant 0 : index
    %110 = vector.load %arg5[%c0_52, %c0_53] : memref<32x128xf32, #tpu.memory_space<vmem>>, vector<32x128xf32>
    %cst_54 = arith.constant dense<0.000000e+00> : vector<8x128xf32>
    %111 = tpu.matmul %81, %110, %cst_54 {dimension_numbers = #tpu.dot_dimension_numbers<[1], [0], [0], [1], [0, 0, 1, 1], [], []>} : vector<8x32xf32>, vector<32x128xf32>, vector<8x128xf32> -> vector<8x128xf32>
    %112 = arith.addf %109, %111 : vector<8x128xf32>
    %113 = arith.negf %112 : vector<8x128xf32>
    %114 = math.exp %113 : vector<8x128xf32>
    %cst_55 = arith.constant 1.000000e+00 : f32
    %115 = vector.broadcast %cst_55 : f32 to vector<8x128xf32>
    %116 = arith.addf %115, %114 : vector<8x128xf32>
    %117 = arith.divf %115, %116 : vector<8x128xf32>
    %118 = vector.extract_strided_slice %117 {offsets = [0, 0], sizes = [8, 32], strides = [1, 1]} : vector<8x128xf32> to vector<8x32xf32>
    %119 = vector.extract_strided_slice %117 {offsets = [0, 32], sizes = [8, 32], strides = [1, 1]} : vector<8x128xf32> to vector<8x32xf32>
    %120 = vector.extract_strided_slice %117 {offsets = [0, 96], sizes = [8, 32], strides = [1, 1]} : vector<8x128xf32> to vector<8x32xf32>
    %121 = vector.extract_strided_slice %112 {offsets = [0, 64], sizes = [8, 32], strides = [1, 1]} : vector<8x128xf32> to vector<8x32xf32>
    %122 = math.tanh %121 : vector<8x32xf32>
    %123 = arith.mulf %119, %79 : vector<8x32xf32>
    %124 = arith.mulf %118, %122 : vector<8x32xf32>
    %125 = arith.addf %123, %124 : vector<8x32xf32>
    %126 = math.tanh %125 : vector<8x32xf32>
    %127 = arith.mulf %120, %126 : vector<8x32xf32>
    %c0_56 = arith.constant 0 : index
    %c0_57 = arith.constant 0 : index
    %128 = vector.load %arg7[%c0_56, %c0_57] : memref<32x128xf32, #tpu.memory_space<vmem>>, vector<32x128xf32>
    %cst_58 = arith.constant dense<0.000000e+00> : vector<8x128xf32>
    %129 = tpu.matmul %127, %128, %cst_58 {dimension_numbers = #tpu.dot_dimension_numbers<[1], [0], [0], [1], [0, 0, 1, 1], [], []>} : vector<8x32xf32>, vector<32x128xf32>, vector<8x128xf32> -> vector<8x128xf32>
    %130 = arith.addf %106, %129 : vector<8x128xf32>
    %131 = arith.addf %130, %57 : vector<8x128xf32>
    %132 = arith.negf %131 : vector<8x128xf32>
    %133 = math.exp %132 : vector<8x128xf32>
    %cst_59 = arith.constant 1.000000e+00 : f32
    %134 = vector.broadcast %cst_59 : f32 to vector<8x128xf32>
    %135 = arith.addf %134, %133 : vector<8x128xf32>
    %136 = arith.divf %134, %135 : vector<8x128xf32>
    %137 = vector.extract_strided_slice %136 {offsets = [0, 0], sizes = [8, 32], strides = [1, 1]} : vector<8x128xf32> to vector<8x32xf32>
    %138 = vector.extract_strided_slice %136 {offsets = [0, 32], sizes = [8, 32], strides = [1, 1]} : vector<8x128xf32> to vector<8x32xf32>
    %139 = vector.extract_strided_slice %136 {offsets = [0, 96], sizes = [8, 32], strides = [1, 1]} : vector<8x128xf32> to vector<8x32xf32>
    %140 = vector.extract_strided_slice %131 {offsets = [0, 64], sizes = [8, 32], strides = [1, 1]} : vector<8x128xf32> to vector<8x32xf32>
    %141 = math.tanh %140 : vector<8x32xf32>
    %142 = arith.mulf %138, %98 : vector<8x32xf32>
    %143 = arith.mulf %137, %141 : vector<8x32xf32>
    %144 = arith.addf %142, %143 : vector<8x32xf32>
    %145 = math.tanh %144 : vector<8x32xf32>
    %146 = arith.mulf %139, %145 : vector<8x32xf32>
    %147 = arith.index_cast %c1_i32 : i32 to index
    %c0_60 = arith.constant 0 : index
    %c0_61 = arith.constant 0 : index
    %148 = vector.load %arg14[%147, %c0_60, %c0_61] : memref<8x8x32xf32, #tpu.memory_space<vmem>>, vector<1x8x32xf32>
    %149 = vector.shape_cast %148 : vector<1x8x32xf32> to vector<8x32xf32>
    %150 = vector.shape_cast %146 : vector<8x32xf32> to vector<1x8x32xf32>
    tpu.vector_store %arg14[%147, %c0_60, %c0_61], %150 {strides = array<i32>} : memref<8x8x32xf32, #tpu.memory_space<vmem>>, vector<1x8x32xf32>,
    %c2_i32 = arith.constant 2 : i32
    %c0_62 = arith.constant 0 : index
    %c0_63 = arith.constant 0 : index
    %151 = vector.load %arg8[%c0_62, %c0_63] : memref<32x128xf32, #tpu.memory_space<vmem>>, vector<32x128xf32>
    %cst_64 = arith.constant dense<0.000000e+00> : vector<8x128xf32>
    %152 = tpu.matmul %146, %151, %cst_64 {dimension_numbers = #tpu.dot_dimension_numbers<[1], [0], [0], [1], [0, 0, 1, 1], [], []>} : vector<8x32xf32>, vector<32x128xf32>, vector<8x128xf32> -> vector<8x128xf32>
    %153 = arith.index_cast %c2_i32 : i32 to index
    %c0_65 = arith.constant 0 : index
    %c0_66 = arith.constant 0 : index
    %154 = vector.load %arg13[%153, %c0_65, %c0_66] : memref<8x8x128xf32, #tpu.memory_space<vmem>>, vector<1x8x128xf32>
    %155 = vector.shape_cast %154 : vector<1x8x128xf32> to vector<8x128xf32>
    %c0_67 = arith.constant 0 : index
    %c0_68 = arith.constant 0 : index
    %156 = vector.load %arg5[%c0_67, %c0_68] : memref<32x128xf32, #tpu.memory_space<vmem>>, vector<32x128xf32>
    %cst_69 = arith.constant dense<0.000000e+00> : vector<8x128xf32>
    %157 = tpu.matmul %127, %156, %cst_69 {dimension_numbers = #tpu.dot_dimension_numbers<[1], [0], [0], [1], [0, 0, 1, 1], [], []>} : vector<8x32xf32>, vector<32x128xf32>, vector<8x128xf32> -> vector<8x128xf32>
    %158 = arith.addf %155, %157 : vector<8x128xf32>
    %159 = arith.negf %158 : vector<8x128xf32>
    %160 = math.exp %159 : vector<8x128xf32>
    %cst_70 = arith.constant 1.000000e+00 : f32
    %161 = vector.broadcast %cst_70 : f32 to vector<8x128xf32>
    %162 = arith.addf %161, %160 : vector<8x128xf32>
    %163 = arith.divf %161, %162 : vector<8x128xf32>
    %164 = vector.extract_strided_slice %163 {offsets = [0, 0], sizes = [8, 32], strides = [1, 1]} : vector<8x128xf32> to vector<8x32xf32>
    %165 = vector.extract_strided_slice %163 {offsets = [0, 32], sizes = [8, 32], strides = [1, 1]} : vector<8x128xf32> to vector<8x32xf32>
    %166 = vector.extract_strided_slice %163 {offsets = [0, 96], sizes = [8, 32], strides = [1, 1]} : vector<8x128xf32> to vector<8x32xf32>
    %167 = vector.extract_strided_slice %158 {offsets = [0, 64], sizes = [8, 32], strides = [1, 1]} : vector<8x128xf32> to vector<8x32xf32>
    %168 = math.tanh %167 : vector<8x32xf32>
    %169 = arith.mulf %165, %125 : vector<8x32xf32>
    %170 = arith.mulf %164, %168 : vector<8x32xf32>
    %171 = arith.addf %169, %170 : vector<8x32xf32>
    %172 = math.tanh %171 : vector<8x32xf32>
    %173 = arith.mulf %166, %172 : vector<8x32xf32>
    %c0_71 = arith.constant 0 : index
    %c0_72 = arith.constant 0 : index
    %174 = vector.load %arg7[%c0_71, %c0_72] : memref<32x128xf32, #tpu.memory_space<vmem>>, vector<32x128xf32>
    %cst_73 = arith.constant dense<0.000000e+00> : vector<8x128xf32>
    %175 = tpu.matmul %173, %174, %cst_73 {dimension_numbers = #tpu.dot_dimension_numbers<[1], [0], [0], [1], [0, 0, 1, 1], [], []>} : vector<8x32xf32>, vector<32x128xf32>, vector<8x128xf32> -> vector<8x128xf32>
    %176 = arith.addf %152, %175 : vector<8x128xf32>
    %177 = arith.addf %176, %57 : vector<8x128xf32>
    %178 = arith.negf %177 : vector<8x128xf32>
    %179 = math.exp %178 : vector<8x128xf32>
    %cst_74 = arith.constant 1.000000e+00 : f32
    %180 = vector.broadcast %cst_74 : f32 to vector<8x128xf32>
    %181 = arith.addf %180, %179 : vector<8x128xf32>
    %182 = arith.divf %180, %181 : vector<8x128xf32>
    %183 = vector.extract_strided_slice %182 {offsets = [0, 0], sizes = [8, 32], strides = [1, 1]} : vector<8x128xf32> to vector<8x32xf32>
    %184 = vector.extract_strided_slice %182 {offsets = [0, 32], sizes = [8, 32], strides = [1, 1]} : vector<8x128xf32> to vector<8x32xf32>
    %185 = vector.extract_strided_slice %182 {offsets = [0, 96], sizes = [8, 32], strides = [1, 1]} : vector<8x128xf32> to vector<8x32xf32>
    %186 = vector.extract_strided_slice %177 {offsets = [0, 64], sizes = [8, 32], strides = [1, 1]} : vector<8x128xf32> to vector<8x32xf32>
    %187 = math.tanh %186 : vector<8x32xf32>
    %188 = arith.mulf %184, %144 : vector<8x32xf32>
    %189 = arith.mulf %183, %187 : vector<8x32xf32>
    %190 = arith.addf %188, %189 : vector<8x32xf32>
    %191 = math.tanh %190 : vector<8x32xf32>
    %192 = arith.mulf %185, %191 : vector<8x32xf32>
    %193 = arith.index_cast %c2_i32 : i32 to index
    %c0_75 = arith.constant 0 : index
    %c0_76 = arith.constant 0 : index
    %194 = vector.load %arg14[%193, %c0_75, %c0_76] : memref<8x8x32xf32, #tpu.memory_space<vmem>>, vector<1x8x32xf32>
    %195 = vector.shape_cast %194 : vector<1x8x32xf32> to vector<8x32xf32>
    %196 = vector.shape_cast %192 : vector<8x32xf32> to vector<1x8x32xf32>
    tpu.vector_store %arg14[%193, %c0_75, %c0_76], %196 {strides = array<i32>} : memref<8x8x32xf32, #tpu.memory_space<vmem>>, vector<1x8x32xf32>,
    %c3_i32 = arith.constant 3 : i32
    %c0_77 = arith.constant 0 : index
    %c0_78 = arith.constant 0 : index
    %197 = vector.load %arg8[%c0_77, %c0_78] : memref<32x128xf32, #tpu.memory_space<vmem>>, vector<32x128xf32>
    %cst_79 = arith.constant dense<0.000000e+00> : vector<8x128xf32>
    %198 = tpu.matmul %192, %197, %cst_79 {dimension_numbers = #tpu.dot_dimension_numbers<[1], [0], [0], [1], [0, 0, 1, 1], [], []>} : vector<8x32xf32>, vector<32x128xf32>, vector<8x128xf32> -> vector<8x128xf32>
    %199 = arith.index_cast %c3_i32 : i32 to index
    %c0_80 = arith.constant 0 : index
    %c0_81 = arith.constant 0 : index
    %200 = vector.load %arg13[%199, %c0_80, %c0_81] : memref<8x8x128xf32, #tpu.memory_space<vmem>>, vector<1x8x128xf32>
    %201 = vector.shape_cast %200 : vector<1x8x128xf32> to vector<8x128xf32>
    %c0_82 = arith.constant 0 : index
    %c0_83 = arith.constant 0 : index
    %202 = vector.load %arg5[%c0_82, %c0_83] : memref<32x128xf32, #tpu.memory_space<vmem>>, vector<32x128xf32>
    %cst_84 = arith.constant dense<0.000000e+00> : vector<8x128xf32>
    %203 = tpu.matmul %173, %202, %cst_84 {dimension_numbers = #tpu.dot_dimension_numbers<[1], [0], [0], [1], [0, 0, 1, 1], [], []>} : vector<8x32xf32>, vector<32x128xf32>, vector<8x128xf32> -> vector<8x128xf32>
    %204 = arith.addf %201, %203 : vector<8x128xf32>
    %205 = arith.negf %204 : vector<8x128xf32>
    %206 = math.exp %205 : vector<8x128xf32>
    %cst_85 = arith.constant 1.000000e+00 : f32
    %207 = vector.broadcast %cst_85 : f32 to vector<8x128xf32>
    %208 = arith.addf %207, %206 : vector<8x128xf32>
    %209 = arith.divf %207, %208 : vector<8x128xf32>
    %210 = vector.extract_strided_slice %209 {offsets = [0, 0], sizes = [8, 32], strides = [1, 1]} : vector<8x128xf32> to vector<8x32xf32>
    %211 = vector.extract_strided_slice %209 {offsets = [0, 32], sizes = [8, 32], strides = [1, 1]} : vector<8x128xf32> to vector<8x32xf32>
    %212 = vector.extract_strided_slice %209 {offsets = [0, 96], sizes = [8, 32], strides = [1, 1]} : vector<8x128xf32> to vector<8x32xf32>
    %213 = vector.extract_strided_slice %204 {offsets = [0, 64], sizes = [8, 32], strides = [1, 1]} : vector<8x128xf32> to vector<8x32xf32>
    %214 = math.tanh %213 : vector<8x32xf32>
    %215 = arith.mulf %211, %171 : vector<8x32xf32>
    %216 = arith.mulf %210, %214 : vector<8x32xf32>
    %217 = arith.addf %215, %216 : vector<8x32xf32>
    %218 = math.tanh %217 : vector<8x32xf32>
    %219 = arith.mulf %212, %218 : vector<8x32xf32>
    %c0_86 = arith.constant 0 : index
    %c0_87 = arith.constant 0 : index
    %220 = vector.load %arg7[%c0_86, %c0_87] : memref<32x128xf32, #tpu.memory_space<vmem>>, vector<32x128xf32>
    %cst_88 = arith.constant dense<0.000000e+00> : vector<8x128xf32>
    %221 = tpu.matmul %219, %220, %cst_88 {dimension_numbers = #tpu.dot_dimension_numbers<[1], [0], [0], [1], [0, 0, 1, 1], [], []>} : vector<8x32xf32>, vector<32x128xf32>, vector<8x128xf32> -> vector<8x128xf32>
    %222 = arith.addf %198, %221 : vector<8x128xf32>
    %223 = arith.addf %222, %57 : vector<8x128xf32>
    %224 = arith.negf %223 : vector<8x128xf32>
    %225 = math.exp %224 : vector<8x128xf32>
    %cst_89 = arith.constant 1.000000e+00 : f32
    %226 = vector.broadcast %cst_89 : f32 to vector<8x128xf32>
    %227 = arith.addf %226, %225 : vector<8x128xf32>
    %228 = arith.divf %226, %227 : vector<8x128xf32>
    %229 = vector.extract_strided_slice %228 {offsets = [0, 0], sizes = [8, 32], strides = [1, 1]} : vector<8x128xf32> to vector<8x32xf32>
    %230 = vector.extract_strided_slice %228 {offsets = [0, 32], sizes = [8, 32], strides = [1, 1]} : vector<8x128xf32> to vector<8x32xf32>
    %231 = vector.extract_strided_slice %228 {offsets = [0, 96], sizes = [8, 32], strides = [1, 1]} : vector<8x128xf32> to vector<8x32xf32>
    %232 = vector.extract_strided_slice %223 {offsets = [0, 64], sizes = [8, 32], strides = [1, 1]} : vector<8x128xf32> to vector<8x32xf32>
    %233 = math.tanh %232 : vector<8x32xf32>
    %234 = arith.mulf %230, %190 : vector<8x32xf32>
    %235 = arith.mulf %229, %233 : vector<8x32xf32>
    %236 = arith.addf %234, %235 : vector<8x32xf32>
    %237 = math.tanh %236 : vector<8x32xf32>
    %238 = arith.mulf %231, %237 : vector<8x32xf32>
    %239 = arith.index_cast %c3_i32 : i32 to index
    %c0_90 = arith.constant 0 : index
    %c0_91 = arith.constant 0 : index
    %240 = vector.load %arg14[%239, %c0_90, %c0_91] : memref<8x8x32xf32, #tpu.memory_space<vmem>>, vector<1x8x32xf32>
    %241 = vector.shape_cast %240 : vector<1x8x32xf32> to vector<8x32xf32>
    %242 = vector.shape_cast %238 : vector<8x32xf32> to vector<1x8x32xf32>
    tpu.vector_store %arg14[%239, %c0_90, %c0_91], %242 {strides = array<i32>} : memref<8x8x32xf32, #tpu.memory_space<vmem>>, vector<1x8x32xf32>,
    %c4_i32 = arith.constant 4 : i32
    %c0_92 = arith.constant 0 : index
    %c0_93 = arith.constant 0 : index
    %243 = vector.load %arg8[%c0_92, %c0_93] : memref<32x128xf32, #tpu.memory_space<vmem>>, vector<32x128xf32>
    %cst_94 = arith.constant dense<0.000000e+00> : vector<8x128xf32>
    %244 = tpu.matmul %238, %243, %cst_94 {dimension_numbers = #tpu.dot_dimension_numbers<[1], [0], [0], [1], [0, 0, 1, 1], [], []>} : vector<8x32xf32>, vector<32x128xf32>, vector<8x128xf32> -> vector<8x128xf32>
    %245 = arith.index_cast %c4_i32 : i32 to index
    %c0_95 = arith.constant 0 : index
    %c0_96 = arith.constant 0 : index
    %246 = vector.load %arg13[%245, %c0_95, %c0_96] : memref<8x8x128xf32, #tpu.memory_space<vmem>>, vector<1x8x128xf32>
    %247 = vector.shape_cast %246 : vector<1x8x128xf32> to vector<8x128xf32>
    %c0_97 = arith.constant 0 : index
    %c0_98 = arith.constant 0 : index
    %248 = vector.load %arg5[%c0_97, %c0_98] : memref<32x128xf32, #tpu.memory_space<vmem>>, vector<32x128xf32>
    %cst_99 = arith.constant dense<0.000000e+00> : vector<8x128xf32>
    %249 = tpu.matmul %219, %248, %cst_99 {dimension_numbers = #tpu.dot_dimension_numbers<[1], [0], [0], [1], [0, 0, 1, 1], [], []>} : vector<8x32xf32>, vector<32x128xf32>, vector<8x128xf32> -> vector<8x128xf32>
    %250 = arith.addf %247, %249 : vector<8x128xf32>
    %251 = arith.negf %250 : vector<8x128xf32>
    %252 = math.exp %251 : vector<8x128xf32>
    %cst_100 = arith.constant 1.000000e+00 : f32
    %253 = vector.broadcast %cst_100 : f32 to vector<8x128xf32>
    %254 = arith.addf %253, %252 : vector<8x128xf32>
    %255 = arith.divf %253, %254 : vector<8x128xf32>
    %256 = vector.extract_strided_slice %255 {offsets = [0, 0], sizes = [8, 32], strides = [1, 1]} : vector<8x128xf32> to vector<8x32xf32>
    %257 = vector.extract_strided_slice %255 {offsets = [0, 32], sizes = [8, 32], strides = [1, 1]} : vector<8x128xf32> to vector<8x32xf32>
    %258 = vector.extract_strided_slice %255 {offsets = [0, 96], sizes = [8, 32], strides = [1, 1]} : vector<8x128xf32> to vector<8x32xf32>
    %259 = vector.extract_strided_slice %250 {offsets = [0, 64], sizes = [8, 32], strides = [1, 1]} : vector<8x128xf32> to vector<8x32xf32>
    %260 = math.tanh %259 : vector<8x32xf32>
    %261 = arith.mulf %257, %217 : vector<8x32xf32>
    %262 = arith.mulf %256, %260 : vector<8x32xf32>
    %263 = arith.addf %261, %262 : vector<8x32xf32>
    %264 = math.tanh %263 : vector<8x32xf32>
    %265 = arith.mulf %258, %264 : vector<8x32xf32>
    %c0_101 = arith.constant 0 : index
    %c0_102 = arith.constant 0 : index
    %266 = vector.load %arg7[%c0_101, %c0_102] : memref<32x128xf32, #tpu.memory_space<vmem>>, vector<32x128xf32>
    %cst_103 = arith.constant dense<0.000000e+00> : vector<8x128xf32>
    %267 = tpu.matmul %265, %266, %cst_103 {dimension_numbers = #tpu.dot_dimension_numbers<[1], [0], [0], [1], [0, 0, 1, 1], [], []>} : vector<8x32xf32>, vector<32x128xf32>, vector<8x128xf32> -> vector<8x128xf32>
    %268 = arith.addf %244, %267 : vector<8x128xf32>
    %269 = arith.addf %268, %57 : vector<8x128xf32>
    %270 = arith.negf %269 : vector<8x128xf32>
    %271 = math.exp %270 : vector<8x128xf32>
    %cst_104 = arith.constant 1.000000e+00 : f32
    %272 = vector.broadcast %cst_104 : f32 to vector<8x128xf32>
    %273 = arith.addf %272, %271 : vector<8x128xf32>
    %274 = arith.divf %272, %273 : vector<8x128xf32>
    %275 = vector.extract_strided_slice %274 {offsets = [0, 0], sizes = [8, 32], strides = [1, 1]} : vector<8x128xf32> to vector<8x32xf32>
    %276 = vector.extract_strided_slice %274 {offsets = [0, 32], sizes = [8, 32], strides = [1, 1]} : vector<8x128xf32> to vector<8x32xf32>
    %277 = vector.extract_strided_slice %274 {offsets = [0, 96], sizes = [8, 32], strides = [1, 1]} : vector<8x128xf32> to vector<8x32xf32>
    %278 = vector.extract_strided_slice %269 {offsets = [0, 64], sizes = [8, 32], strides = [1, 1]} : vector<8x128xf32> to vector<8x32xf32>
    %279 = math.tanh %278 : vector<8x32xf32>
    %280 = arith.mulf %276, %236 : vector<8x32xf32>
    %281 = arith.mulf %275, %279 : vector<8x32xf32>
    %282 = arith.addf %280, %281 : vector<8x32xf32>
    %283 = math.tanh %282 : vector<8x32xf32>
    %284 = arith.mulf %277, %283 : vector<8x32xf32>
    %285 = arith.index_cast %c4_i32 : i32 to index
    %c0_105 = arith.constant 0 : index
    %c0_106 = arith.constant 0 : index
    %286 = vector.load %arg14[%285, %c0_105, %c0_106] : memref<8x8x32xf32, #tpu.memory_space<vmem>>, vector<1x8x32xf32>
    %287 = vector.shape_cast %286 : vector<1x8x32xf32> to vector<8x32xf32>
    %288 = vector.shape_cast %284 : vector<8x32xf32> to vector<1x8x32xf32>
    tpu.vector_store %arg14[%285, %c0_105, %c0_106], %288 {strides = array<i32>} : memref<8x8x32xf32, #tpu.memory_space<vmem>>, vector<1x8x32xf32>,
    %c5_i32 = arith.constant 5 : i32
    %c0_107 = arith.constant 0 : index
    %c0_108 = arith.constant 0 : index
    %289 = vector.load %arg8[%c0_107, %c0_108] : memref<32x128xf32, #tpu.memory_space<vmem>>, vector<32x128xf32>
    %cst_109 = arith.constant dense<0.000000e+00> : vector<8x128xf32>
    %290 = tpu.matmul %284, %289, %cst_109 {dimension_numbers = #tpu.dot_dimension_numbers<[1], [0], [0], [1], [0, 0, 1, 1], [], []>} : vector<8x32xf32>, vector<32x128xf32>, vector<8x128xf32> -> vector<8x128xf32>
    %291 = arith.index_cast %c5_i32 : i32 to index
    %c0_110 = arith.constant 0 : index
    %c0_111 = arith.constant 0 : index
    %292 = vector.load %arg13[%291, %c0_110, %c0_111] : memref<8x8x128xf32, #tpu.memory_space<vmem>>, vector<1x8x128xf32>
    %293 = vector.shape_cast %292 : vector<1x8x128xf32> to vector<8x128xf32>
    %c0_112 = arith.constant 0 : index
    %c0_113 = arith.constant 0 : index
    %294 = vector.load %arg5[%c0_112, %c0_113] : memref<32x128xf32, #tpu.memory_space<vmem>>, vector<32x128xf32>
    %cst_114 = arith.constant dense<0.000000e+00> : vector<8x128xf32>
    %295 = tpu.matmul %265, %294, %cst_114 {dimension_numbers = #tpu.dot_dimension_numbers<[1], [0], [0], [1], [0, 0, 1, 1], [], []>} : vector<8x32xf32>, vector<32x128xf32>, vector<8x128xf32> -> vector<8x128xf32>
    %296 = arith.addf %293, %295 : vector<8x128xf32>
    %297 = arith.negf %296 : vector<8x128xf32>
    %298 = math.exp %297 : vector<8x128xf32>
    %cst_115 = arith.constant 1.000000e+00 : f32
    %299 = vector.broadcast %cst_115 : f32 to vector<8x128xf32>
    %300 = arith.addf %299, %298 : vector<8x128xf32>
    %301 = arith.divf %299, %300 : vector<8x128xf32>
    %302 = vector.extract_strided_slice %301 {offsets = [0, 0], sizes = [8, 32], strides = [1, 1]} : vector<8x128xf32> to vector<8x32xf32>
    %303 = vector.extract_strided_slice %301 {offsets = [0, 32], sizes = [8, 32], strides = [1, 1]} : vector<8x128xf32> to vector<8x32xf32>
    %304 = vector.extract_strided_slice %301 {offsets = [0, 96], sizes = [8, 32], strides = [1, 1]} : vector<8x128xf32> to vector<8x32xf32>
    %305 = vector.extract_strided_slice %296 {offsets = [0, 64], sizes = [8, 32], strides = [1, 1]} : vector<8x128xf32> to vector<8x32xf32>
    %306 = math.tanh %305 : vector<8x32xf32>
    %307 = arith.mulf %303, %263 : vector<8x32xf32>
    %308 = arith.mulf %302, %306 : vector<8x32xf32>
    %309 = arith.addf %307, %308 : vector<8x32xf32>
    %310 = math.tanh %309 : vector<8x32xf32>
    %311 = arith.mulf %304, %310 : vector<8x32xf32>
    %c0_116 = arith.constant 0 : index
    %c0_117 = arith.constant 0 : index
    %312 = vector.load %arg7[%c0_116, %c0_117] : memref<32x128xf32, #tpu.memory_space<vmem>>, vector<32x128xf32>
    %cst_118 = arith.constant dense<0.000000e+00> : vector<8x128xf32>
    %313 = tpu.matmul %311, %312, %cst_118 {dimension_numbers = #tpu.dot_dimension_numbers<[1], [0], [0], [1], [0, 0, 1, 1], [], []>} : vector<8x32xf32>, vector<32x128xf32>, vector<8x128xf32> -> vector<8x128xf32>
    %314 = arith.addf %290, %313 : vector<8x128xf32>
    %315 = arith.addf %314, %57 : vector<8x128xf32>
    %316 = arith.negf %315 : vector<8x128xf32>
    %317 = math.exp %316 : vector<8x128xf32>
    %cst_119 = arith.constant 1.000000e+00 : f32
    %318 = vector.broadcast %cst_119 : f32 to vector<8x128xf32>
    %319 = arith.addf %318, %317 : vector<8x128xf32>
    %320 = arith.divf %318, %319 : vector<8x128xf32>
    %321 = vector.extract_strided_slice %320 {offsets = [0, 0], sizes = [8, 32], strides = [1, 1]} : vector<8x128xf32> to vector<8x32xf32>
    %322 = vector.extract_strided_slice %320 {offsets = [0, 32], sizes = [8, 32], strides = [1, 1]} : vector<8x128xf32> to vector<8x32xf32>
    %323 = vector.extract_strided_slice %320 {offsets = [0, 96], sizes = [8, 32], strides = [1, 1]} : vector<8x128xf32> to vector<8x32xf32>
    %324 = vector.extract_strided_slice %315 {offsets = [0, 64], sizes = [8, 32], strides = [1, 1]} : vector<8x128xf32> to vector<8x32xf32>
    %325 = math.tanh %324 : vector<8x32xf32>
    %326 = arith.mulf %322, %282 : vector<8x32xf32>
    %327 = arith.mulf %321, %325 : vector<8x32xf32>
    %328 = arith.addf %326, %327 : vector<8x32xf32>
    %329 = math.tanh %328 : vector<8x32xf32>
    %330 = arith.mulf %323, %329 : vector<8x32xf32>
    %331 = arith.index_cast %c5_i32 : i32 to index
    %c0_120 = arith.constant 0 : index
    %c0_121 = arith.constant 0 : index
    %332 = vector.load %arg14[%331, %c0_120, %c0_121] : memref<8x8x32xf32, #tpu.memory_space<vmem>>, vector<1x8x32xf32>
    %333 = vector.shape_cast %332 : vector<1x8x32xf32> to vector<8x32xf32>
    %334 = vector.shape_cast %330 : vector<8x32xf32> to vector<1x8x32xf32>
    tpu.vector_store %arg14[%331, %c0_120, %c0_121], %334 {strides = array<i32>} : memref<8x8x32xf32, #tpu.memory_space<vmem>>, vector<1x8x32xf32>,
    %c6_i32 = arith.constant 6 : i32
    %c0_122 = arith.constant 0 : index
    %c0_123 = arith.constant 0 : index
    %335 = vector.load %arg8[%c0_122, %c0_123] : memref<32x128xf32, #tpu.memory_space<vmem>>, vector<32x128xf32>
    %cst_124 = arith.constant dense<0.000000e+00> : vector<8x128xf32>
    %336 = tpu.matmul %330, %335, %cst_124 {dimension_numbers = #tpu.dot_dimension_numbers<[1], [0], [0], [1], [0, 0, 1, 1], [], []>} : vector<8x32xf32>, vector<32x128xf32>, vector<8x128xf32> -> vector<8x128xf32>
    %337 = arith.index_cast %c6_i32 : i32 to index
    %c0_125 = arith.constant 0 : index
    %c0_126 = arith.constant 0 : index
    %338 = vector.load %arg13[%337, %c0_125, %c0_126] : memref<8x8x128xf32, #tpu.memory_space<vmem>>, vector<1x8x128xf32>
    %339 = vector.shape_cast %338 : vector<1x8x128xf32> to vector<8x128xf32>
    %c0_127 = arith.constant 0 : index
    %c0_128 = arith.constant 0 : index
    %340 = vector.load %arg5[%c0_127, %c0_128] : memref<32x128xf32, #tpu.memory_space<vmem>>, vector<32x128xf32>
    %cst_129 = arith.constant dense<0.000000e+00> : vector<8x128xf32>
    %341 = tpu.matmul %311, %340, %cst_129 {dimension_numbers = #tpu.dot_dimension_numbers<[1], [0], [0], [1], [0, 0, 1, 1], [], []>} : vector<8x32xf32>, vector<32x128xf32>, vector<8x128xf32> -> vector<8x128xf32>
    %342 = arith.addf %339, %341 : vector<8x128xf32>
    %343 = arith.negf %342 : vector<8x128xf32>
    %344 = math.exp %343 : vector<8x128xf32>
    %cst_130 = arith.constant 1.000000e+00 : f32
    %345 = vector.broadcast %cst_130 : f32 to vector<8x128xf32>
    %346 = arith.addf %345, %344 : vector<8x128xf32>
    %347 = arith.divf %345, %346 : vector<8x128xf32>
    %348 = vector.extract_strided_slice %347 {offsets = [0, 0], sizes = [8, 32], strides = [1, 1]} : vector<8x128xf32> to vector<8x32xf32>
    %349 = vector.extract_strided_slice %347 {offsets = [0, 32], sizes = [8, 32], strides = [1, 1]} : vector<8x128xf32> to vector<8x32xf32>
    %350 = vector.extract_strided_slice %347 {offsets = [0, 96], sizes = [8, 32], strides = [1, 1]} : vector<8x128xf32> to vector<8x32xf32>
    %351 = vector.extract_strided_slice %342 {offsets = [0, 64], sizes = [8, 32], strides = [1, 1]} : vector<8x128xf32> to vector<8x32xf32>
    %352 = math.tanh %351 : vector<8x32xf32>
    %353 = arith.mulf %349, %309 : vector<8x32xf32>
    %354 = arith.mulf %348, %352 : vector<8x32xf32>
    %355 = arith.addf %353, %354 : vector<8x32xf32>
    %356 = math.tanh %355 : vector<8x32xf32>
    %357 = arith.mulf %350, %356 : vector<8x32xf32>
    %c0_131 = arith.constant 0 : index
    %c0_132 = arith.constant 0 : index
    %358 = vector.load %arg7[%c0_131, %c0_132] : memref<32x128xf32, #tpu.memory_space<vmem>>, vector<32x128xf32>
    %cst_133 = arith.constant dense<0.000000e+00> : vector<8x128xf32>
    %359 = tpu.matmul %357, %358, %cst_133 {dimension_numbers = #tpu.dot_dimension_numbers<[1], [0], [0], [1], [0, 0, 1, 1], [], []>} : vector<8x32xf32>, vector<32x128xf32>, vector<8x128xf32> -> vector<8x128xf32>
    %360 = arith.addf %336, %359 : vector<8x128xf32>
    %361 = arith.addf %360, %57 : vector<8x128xf32>
    %362 = arith.negf %361 : vector<8x128xf32>
    %363 = math.exp %362 : vector<8x128xf32>
    %cst_134 = arith.constant 1.000000e+00 : f32
    %364 = vector.broadcast %cst_134 : f32 to vector<8x128xf32>
    %365 = arith.addf %364, %363 : vector<8x128xf32>
    %366 = arith.divf %364, %365 : vector<8x128xf32>
    %367 = vector.extract_strided_slice %366 {offsets = [0, 0], sizes = [8, 32], strides = [1, 1]} : vector<8x128xf32> to vector<8x32xf32>
    %368 = vector.extract_strided_slice %366 {offsets = [0, 32], sizes = [8, 32], strides = [1, 1]} : vector<8x128xf32> to vector<8x32xf32>
    %369 = vector.extract_strided_slice %366 {offsets = [0, 96], sizes = [8, 32], strides = [1, 1]} : vector<8x128xf32> to vector<8x32xf32>
    %370 = vector.extract_strided_slice %361 {offsets = [0, 64], sizes = [8, 32], strides = [1, 1]} : vector<8x128xf32> to vector<8x32xf32>
    %371 = math.tanh %370 : vector<8x32xf32>
    %372 = arith.mulf %368, %328 : vector<8x32xf32>
    %373 = arith.mulf %367, %371 : vector<8x32xf32>
    %374 = arith.addf %372, %373 : vector<8x32xf32>
    %375 = math.tanh %374 : vector<8x32xf32>
    %376 = arith.mulf %369, %375 : vector<8x32xf32>
    %377 = arith.index_cast %c6_i32 : i32 to index
    %c0_135 = arith.constant 0 : index
    %c0_136 = arith.constant 0 : index
    %378 = vector.load %arg14[%377, %c0_135, %c0_136] : memref<8x8x32xf32, #tpu.memory_space<vmem>>, vector<1x8x32xf32>
    %379 = vector.shape_cast %378 : vector<1x8x32xf32> to vector<8x32xf32>
    %380 = vector.shape_cast %376 : vector<8x32xf32> to vector<1x8x32xf32>
    tpu.vector_store %arg14[%377, %c0_135, %c0_136], %380 {strides = array<i32>} : memref<8x8x32xf32, #tpu.memory_space<vmem>>, vector<1x8x32xf32>,
    %c7_i32 = arith.constant 7 : i32
    %c0_137 = arith.constant 0 : index
    %c0_138 = arith.constant 0 : index
    %381 = vector.load %arg8[%c0_137, %c0_138] : memref<32x128xf32, #tpu.memory_space<vmem>>, vector<32x128xf32>
    %cst_139 = arith.constant dense<0.000000e+00> : vector<8x128xf32>
    %382 = tpu.matmul %376, %381, %cst_139 {dimension_numbers = #tpu.dot_dimension_numbers<[1], [0], [0], [1], [0, 0, 1, 1], [], []>} : vector<8x32xf32>, vector<32x128xf32>, vector<8x128xf32> -> vector<8x128xf32>
    %383 = arith.index_cast %c7_i32 : i32 to index
    %c0_140 = arith.constant 0 : index
    %c0_141 = arith.constant 0 : index
    %384 = vector.load %arg13[%383, %c0_140, %c0_141] : memref<8x8x128xf32, #tpu.memory_space<vmem>>, vector<1x8x128xf32>
    %385 = vector.shape_cast %384 : vector<1x8x128xf32> to vector<8x128xf32>
    %c0_142 = arith.constant 0 : index
    %c0_143 = arith.constant 0 : index
    %386 = vector.load %arg5[%c0_142, %c0_143] : memref<32x128xf32, #tpu.memory_space<vmem>>, vector<32x128xf32>
    %cst_144 = arith.constant dense<0.000000e+00> : vector<8x128xf32>
    %387 = tpu.matmul %357, %386, %cst_144 {dimension_numbers = #tpu.dot_dimension_numbers<[1], [0], [0], [1], [0, 0, 1, 1], [], []>} : vector<8x32xf32>, vector<32x128xf32>, vector<8x128xf32> -> vector<8x128xf32>
    %388 = arith.addf %385, %387 : vector<8x128xf32>
    %389 = arith.negf %388 : vector<8x128xf32>
    %390 = math.exp %389 : vector<8x128xf32>
    %cst_145 = arith.constant 1.000000e+00 : f32
    %391 = vector.broadcast %cst_145 : f32 to vector<8x128xf32>
    %392 = arith.addf %391, %390 : vector<8x128xf32>
    %393 = arith.divf %391, %392 : vector<8x128xf32>
    %394 = vector.extract_strided_slice %393 {offsets = [0, 0], sizes = [8, 32], strides = [1, 1]} : vector<8x128xf32> to vector<8x32xf32>
    %395 = vector.extract_strided_slice %393 {offsets = [0, 32], sizes = [8, 32], strides = [1, 1]} : vector<8x128xf32> to vector<8x32xf32>
    %396 = vector.extract_strided_slice %393 {offsets = [0, 96], sizes = [8, 32], strides = [1, 1]} : vector<8x128xf32> to vector<8x32xf32>
    %397 = vector.extract_strided_slice %388 {offsets = [0, 64], sizes = [8, 32], strides = [1, 1]} : vector<8x128xf32> to vector<8x32xf32>
    %398 = math.tanh %397 : vector<8x32xf32>
    %399 = arith.mulf %395, %355 : vector<8x32xf32>
    %400 = arith.mulf %394, %398 : vector<8x32xf32>
    %401 = arith.addf %399, %400 : vector<8x32xf32>
    %402 = math.tanh %401 : vector<8x32xf32>
    %403 = arith.mulf %396, %402 : vector<8x32xf32>
    %c0_146 = arith.constant 0 : index
    %c0_147 = arith.constant 0 : index
    %404 = vector.load %arg7[%c0_146, %c0_147] : memref<32x128xf32, #tpu.memory_space<vmem>>, vector<32x128xf32>
    %cst_148 = arith.constant dense<0.000000e+00> : vector<8x128xf32>
    %405 = tpu.matmul %403, %404, %cst_148 {dimension_numbers = #tpu.dot_dimension_numbers<[1], [0], [0], [1], [0, 0, 1, 1], [], []>} : vector<8x32xf32>, vector<32x128xf32>, vector<8x128xf32> -> vector<8x128xf32>
    %406 = arith.addf %382, %405 : vector<8x128xf32>
    %407 = arith.addf %406, %57 : vector<8x128xf32>
    %408 = arith.negf %407 : vector<8x128xf32>
    %409 = math.exp %408 : vector<8x128xf32>
    %cst_149 = arith.constant 1.000000e+00 : f32
    %410 = vector.broadcast %cst_149 : f32 to vector<8x128xf32>
    %411 = arith.addf %410, %409 : vector<8x128xf32>
    %412 = arith.divf %410, %411 : vector<8x128xf32>
    %413 = vector.extract_strided_slice %412 {offsets = [0, 0], sizes = [8, 32], strides = [1, 1]} : vector<8x128xf32> to vector<8x32xf32>
    %414 = vector.extract_strided_slice %412 {offsets = [0, 32], sizes = [8, 32], strides = [1, 1]} : vector<8x128xf32> to vector<8x32xf32>
    %415 = vector.extract_strided_slice %412 {offsets = [0, 96], sizes = [8, 32], strides = [1, 1]} : vector<8x128xf32> to vector<8x32xf32>
    %416 = vector.extract_strided_slice %407 {offsets = [0, 64], sizes = [8, 32], strides = [1, 1]} : vector<8x128xf32> to vector<8x32xf32>
    %417 = math.tanh %416 : vector<8x32xf32>
    %418 = arith.mulf %414, %374 : vector<8x32xf32>
    %419 = arith.mulf %413, %417 : vector<8x32xf32>
    %420 = arith.addf %418, %419 : vector<8x32xf32>
    %421 = math.tanh %420 : vector<8x32xf32>
    %422 = arith.mulf %415, %421 : vector<8x32xf32>
    %423 = arith.index_cast %c7_i32 : i32 to index
    %c0_150 = arith.constant 0 : index
    %c0_151 = arith.constant 0 : index
    %424 = vector.load %arg14[%423, %c0_150, %c0_151] : memref<8x8x32xf32, #tpu.memory_space<vmem>>, vector<1x8x32xf32>
    %425 = vector.shape_cast %424 : vector<1x8x32xf32> to vector<8x32xf32>
    %426 = vector.shape_cast %422 : vector<8x32xf32> to vector<1x8x32xf32>
    tpu.vector_store %arg14[%423, %c0_150, %c0_151], %426 {strides = array<i32>} : memref<8x8x32xf32, #tpu.memory_space<vmem>>, vector<1x8x32xf32>,
    %c8_i32 = arith.constant 8 : i32
    %c0_152 = arith.constant 0 : index
    %c0_153 = arith.constant 0 : index
    %c0_154 = arith.constant 0 : index
    %427 = vector.load %arg14[%c0_152, %c0_153, %c0_154] : memref<8x8x32xf32, #tpu.memory_space<vmem>>, vector<8x8x32xf32>
    %428 = vector.shape_cast %427 : vector<8x8x32xf32> to vector<64x32xf32>
    %c0_155 = arith.constant 0 : index
    %c0_156 = arith.constant 0 : index
    %429 = vector.load %arg10[%c0_155, %c0_156] : memref<32x128xf32, #tpu.memory_space<vmem>>, vector<32x128xf32>
    %cst_157 = arith.constant dense<0.000000e+00> : vector<64x128xf32>
    %430 = tpu.matmul %428, %429, %cst_157 {dimension_numbers = #tpu.dot_dimension_numbers<[1], [0], [0], [1], [0, 0, 1, 1], [], []>} : vector<64x32xf32>, vector<32x128xf32>, vector<64x128xf32> -> vector<64x128xf32>
    %c0_158 = arith.constant 0 : index
    %c0_159 = arith.constant 0 : index
    %431 = vector.load %arg11[%c0_158, %c0_159] : memref<1x128xf32, #tpu.memory_space<vmem>>, vector<1x128xf32>
    %432 = vector.broadcast %431 : vector<1x128xf32> to vector<64x128xf32>
    %433 = arith.addf %430, %432 : vector<64x128xf32>
    %cst_160 = arith.constant 0.000000e+00 : f32
    %434 = vector.broadcast %cst_160 : f32 to vector<64x128xf32>
    %435 = arith.maximumf %433, %434 : vector<64x128xf32>
    %436 = vector.shape_cast %435 : vector<64x128xf32> to vector<8x8x128xf32>
    %437 = vector.extract_strided_slice %436 {offsets = [0, 0, 0], sizes = [1, 8, 128], strides = [1, 1, 1]} : vector<8x8x128xf32> to vector<1x8x128xf32>
    %438 = vector.shape_cast %437 : vector<1x8x128xf32> to vector<8x128xf32>
    %c0_161 = arith.constant 0 : index
    %c0_162 = arith.constant 0 : index
    %c0_163 = arith.constant 0 : index
    %439 = vector.load %arg12[%c0_161, %c0_162, %c0_163] : memref<8x8x128xf32, #tpu.memory_space<vmem>>, vector<8x1x128xf32>
    %440 = vector.shape_cast %439 : vector<8x1x128xf32> to vector<8x128xf32>
    %441 = vector.shape_cast %438 : vector<8x128xf32> to vector<8x1x128xf32>
    tpu.vector_store %arg12[%c0_161, %c0_162, %c0_163], %441 {strides = array<i32>} : memref<8x8x128xf32, #tpu.memory_space<vmem>>, vector<8x1x128xf32>,
    %442 = vector.extract_strided_slice %436 {offsets = [1, 0, 0], sizes = [1, 8, 128], strides = [1, 1, 1]} : vector<8x8x128xf32> to vector<1x8x128xf32>
    %443 = vector.shape_cast %442 : vector<1x8x128xf32> to vector<8x128xf32>
    %c0_164 = arith.constant 0 : index
    %c1_165 = arith.constant 1 : index
    %c0_166 = arith.constant 0 : index
    %444 = vector.load %arg12[%c0_164, %c1_165, %c0_166] : memref<8x8x128xf32, #tpu.memory_space<vmem>>, vector<8x1x128xf32>
    %445 = vector.shape_cast %444 : vector<8x1x128xf32> to vector<8x128xf32>
    %446 = vector.shape_cast %443 : vector<8x128xf32> to vector<8x1x128xf32>
    tpu.vector_store %arg12[%c0_164, %c1_165, %c0_166], %446 {strides = array<i32>} : memref<8x8x128xf32, #tpu.memory_space<vmem>>, vector<8x1x128xf32>,
    %447 = vector.extract_strided_slice %436 {offsets = [2, 0, 0], sizes = [1, 8, 128], strides = [1, 1, 1]} : vector<8x8x128xf32> to vector<1x8x128xf32>
    %448 = vector.shape_cast %447 : vector<1x8x128xf32> to vector<8x128xf32>
    %c0_167 = arith.constant 0 : index
    %c2_168 = arith.constant 2 : index
    %c0_169 = arith.constant 0 : index
    %449 = vector.load %arg12[%c0_167, %c2_168, %c0_169] : memref<8x8x128xf32, #tpu.memory_space<vmem>>, vector<8x1x128xf32>
    %450 = vector.shape_cast %449 : vector<8x1x128xf32> to vector<8x128xf32>
    %451 = vector.shape_cast %448 : vector<8x128xf32> to vector<8x1x128xf32>
    tpu.vector_store %arg12[%c0_167, %c2_168, %c0_169], %451 {strides = array<i32>} : memref<8x8x128xf32, #tpu.memory_space<vmem>>, vector<8x1x128xf32>,
    %452 = vector.extract_strided_slice %436 {offsets = [3, 0, 0], sizes = [1, 8, 128], strides = [1, 1, 1]} : vector<8x8x128xf32> to vector<1x8x128xf32>
    %453 = vector.shape_cast %452 : vector<1x8x128xf32> to vector<8x128xf32>
    %c0_170 = arith.constant 0 : index
    %c3_171 = arith.constant 3 : index
    %c0_172 = arith.constant 0 : index
    %454 = vector.load %arg12[%c0_170, %c3_171, %c0_172] : memref<8x8x128xf32, #tpu.memory_space<vmem>>, vector<8x1x128xf32>
    %455 = vector.shape_cast %454 : vector<8x1x128xf32> to vector<8x128xf32>
    %456 = vector.shape_cast %453 : vector<8x128xf32> to vector<8x1x128xf32>
    tpu.vector_store %arg12[%c0_170, %c3_171, %c0_172], %456 {strides = array<i32>} : memref<8x8x128xf32, #tpu.memory_space<vmem>>, vector<8x1x128xf32>,
    %457 = vector.extract_strided_slice %436 {offsets = [4, 0, 0], sizes = [1, 8, 128], strides = [1, 1, 1]} : vector<8x8x128xf32> to vector<1x8x128xf32>
    %458 = vector.shape_cast %457 : vector<1x8x128xf32> to vector<8x128xf32>
    %c0_173 = arith.constant 0 : index
    %c4_174 = arith.constant 4 : index
    %c0_175 = arith.constant 0 : index
    %459 = vector.load %arg12[%c0_173, %c4_174, %c0_175] : memref<8x8x128xf32, #tpu.memory_space<vmem>>, vector<8x1x128xf32>
    %460 = vector.shape_cast %459 : vector<8x1x128xf32> to vector<8x128xf32>
    %461 = vector.shape_cast %458 : vector<8x128xf32> to vector<8x1x128xf32>
    tpu.vector_store %arg12[%c0_173, %c4_174, %c0_175], %461 {strides = array<i32>} : memref<8x8x128xf32, #tpu.memory_space<vmem>>, vector<8x1x128xf32>,
    %462 = vector.extract_strided_slice %436 {offsets = [5, 0, 0], sizes = [1, 8, 128], strides = [1, 1, 1]} : vector<8x8x128xf32> to vector<1x8x128xf32>
    %463 = vector.shape_cast %462 : vector<1x8x128xf32> to vector<8x128xf32>
    %c0_176 = arith.constant 0 : index
    %c5_177 = arith.constant 5 : index
    %c0_178 = arith.constant 0 : index
    %464 = vector.load %arg12[%c0_176, %c5_177, %c0_178] : memref<8x8x128xf32, #tpu.memory_space<vmem>>, vector<8x1x128xf32>
    %465 = vector.shape_cast %464 : vector<8x1x128xf32> to vector<8x128xf32>
    %466 = vector.shape_cast %463 : vector<8x128xf32> to vector<8x1x128xf32>
    tpu.vector_store %arg12[%c0_176, %c5_177, %c0_178], %466 {strides = array<i32>} : memref<8x8x128xf32, #tpu.memory_space<vmem>>, vector<8x1x128xf32>,
    %467 = vector.extract_strided_slice %436 {offsets = [6, 0, 0], sizes = [1, 8, 128], strides = [1, 1, 1]} : vector<8x8x128xf32> to vector<1x8x128xf32>
    %468 = vector.shape_cast %467 : vector<1x8x128xf32> to vector<8x128xf32>
    %c0_179 = arith.constant 0 : index
    %c6_180 = arith.constant 6 : index
    %c0_181 = arith.constant 0 : index
    %469 = vector.load %arg12[%c0_179, %c6_180, %c0_181] : memref<8x8x128xf32, #tpu.memory_space<vmem>>, vector<8x1x128xf32>
    %470 = vector.shape_cast %469 : vector<8x1x128xf32> to vector<8x128xf32>
    %471 = vector.shape_cast %468 : vector<8x128xf32> to vector<8x1x128xf32>
    tpu.vector_store %arg12[%c0_179, %c6_180, %c0_181], %471 {strides = array<i32>} : memref<8x8x128xf32, #tpu.memory_space<vmem>>, vector<8x1x128xf32>,
    %472 = vector.extract_strided_slice %436 {offsets = [7, 0, 0], sizes = [1, 8, 128], strides = [1, 1, 1]} : vector<8x8x128xf32> to vector<1x8x128xf32>
    %473 = vector.shape_cast %472 : vector<1x8x128xf32> to vector<8x128xf32>
    %c0_182 = arith.constant 0 : index
    %c7_183 = arith.constant 7 : index
    %c0_184 = arith.constant 0 : index
    %474 = vector.load %arg12[%c0_182, %c7_183, %c0_184] : memref<8x8x128xf32, #tpu.memory_space<vmem>>, vector<8x1x128xf32>
    %475 = vector.shape_cast %474 : vector<8x1x128xf32> to vector<8x128xf32>
    %476 = vector.shape_cast %473 : vector<8x128xf32> to vector<8x1x128xf32>
    tpu.vector_store %arg12[%c0_182, %c7_183, %c0_184], %476 {strides = array<i32>} : memref<8x8x128xf32, #tpu.memory_space<vmem>>, vector<8x1x128xf32>,
    return
  }
  func.func @transform_0(%arg0: i32) -> (i32, i32, i32) {
    %c0_i32 = arith.constant 0 : i32
    %c0_i32_0 = arith.constant 0 : i32
    %c0_i32_1 = arith.constant 0 : i32
    return %arg0, %c0_i32, %c0_i32_0 : i32, i32, i32
  }
  func.func @transform_1(%arg0: i32) -> (i32, i32) {
    %c0_i32 = arith.constant 0 : i32
    %c0_i32_0 = arith.constant 0 : i32
    %c0_i32_1 = arith.constant 0 : i32
    return %c0_i32, %c0_i32_0 : i32, i32
  }
  func.func @transform_2(%arg0: i32) -> (i32, i32) {
    %c0_i32 = arith.constant 0 : i32
    %c0_i32_0 = arith.constant 0 : i32
    %c0_i32_1 = arith.constant 0 : i32
    return %c0_i32, %c0_i32_0 : i32, i32
  }
  func.func @transform_3(%arg0: i32) -> (i32, i32) {
    %c0_i32 = arith.constant 0 : i32
    %c0_i32_0 = arith.constant 0 : i32
    %c0_i32_1 = arith.constant 0 : i32
    return %c0_i32, %c0_i32_0 : i32, i32
  }
  func.func @transform_4(%arg0: i32) -> (i32, i32) {
    %c0_i32 = arith.constant 0 : i32
    %c0_i32_0 = arith.constant 0 : i32
    %c0_i32_1 = arith.constant 0 : i32
    return %c0_i32, %c0_i32_0 : i32, i32
  }
  func.func @transform_5(%arg0: i32) -> (i32, i32) {
    %c0_i32 = arith.constant 0 : i32
    %c0_i32_0 = arith.constant 0 : i32
    %c0_i32_1 = arith.constant 0 : i32
    return %c0_i32, %c0_i32_0 : i32, i32
  }
  func.func @transform_6(%arg0: i32) -> (i32, i32) {
    %c0_i32 = arith.constant 0 : i32
    %c0_i32_0 = arith.constant 0 : i32
    %c0_i32_1 = arith.constant 0 : i32
    return %c0_i32, %c0_i32_0 : i32, i32
  }
  func.func @transform_7(%arg0: i32) -> (i32, i32) {
    %c0_i32 = arith.constant 0 : i32
    %c0_i32_0 = arith.constant 0 : i32
    %c0_i32_1 = arith.constant 0 : i32
    return %c0_i32, %c0_i32_0 : i32, i32
  }
  func.func @transform_8(%arg0: i32) -> (i32, i32) {
    %c0_i32 = arith.constant 0 : i32
    %c0_i32_0 = arith.constant 0 : i32
    %c0_i32_1 = arith.constant 0 : i32
    return %c0_i32, %c0_i32_0 : i32, i32
  }
  func.func @transform_9(%arg0: i32) -> (i32, i32) {
    %c0_i32 = arith.constant 0 : i32
    %c0_i32_0 = arith.constant 0 : i32
    %c0_i32_1 = arith.constant 0 : i32
    return %c0_i32, %c0_i32_0 : i32, i32
  }
  func.func @transform_10(%arg0: i32) -> (i32, i32) {
    %c0_i32 = arith.constant 0 : i32
    %c0_i32_0 = arith.constant 0 : i32
    %c0_i32_1 = arith.constant 0 : i32
    return %c0_i32, %c0_i32_0 : i32, i32
  }
  func.func @transform_11(%arg0: i32) -> (i32, i32, i32) {
    %c0_i32 = arith.constant 0 : i32
    %c0_i32_0 = arith.constant 0 : i32
    %c0_i32_1 = arith.constant 0 : i32
    return %arg0, %c0_i32, %c0_i32_0 : i32, i32, i32
  }
}

</mosaic_0001>

<bundles_post_ra>
// kernel: lstm_many2many_forward.1
= control target key start
LH: loop header
LB: loop body
LE: loop exit
PB: predicated region body
PF: predicated region fallthrough
CT: control target
= control target key end

     0   :  { %16 = vsyncpa [#allocation5], 0  ;;  %s5178_s0 = inlined_call_operand.vmem [shape: f32[8,8,128], index: 0, kind: input, shape index: {}]   ;;  %s5179_s1 = inlined_call_operand.vmem [shape: f32[128,32], index: 1, kind: input, shape index: {}]   ;;  %s5180_s2 = inlined_call_operand.vmem [shape: f32[1,32], index: 2, kind: input, shape index: {}]   ;;  %s5181_s3 = inlined_call_operand.vmem [shape: f32[32,128], index: 3, kind: input, shape index: {}]   ;;  %s5182_s4 = inlined_call_operand.vmem [shape: f32[32,128], index: 4, kind: input, shape index: {}]   ;;  %s5183_s5 = inlined_call_operand.vmem [shape: f32[1,128], index: 5, kind: input, shape index: {}]   ;;  %s5184_s6 = inlined_call_operand.vmem [shape: f32[32,128], index: 6, kind: input, shape index: {}]   ;;  %s5185_s7 = inlined_call_operand.hbm [shape: f32[32,128], index: 7, kind: input, shape index: {}]   ;;  %s5186_s8 = inlined_call_operand.vmem [shape: f32[1,128], index: 8, kind: input, shape index: {}]   ;;  %s5187_s9 = inlined_call_operand.hbm [shape: f32[32,128], index: 9, kind: input, shape index: {}]   ;;  %s5188_s10 = inlined_call_operand.vmem [shape: f32[1,128], index: 10, kind: input, shape index: {}]   ;;  %s5189_s11 = inlined_call_operand.hbm [shape: f32[8,8,128], index: 11, kind: output, shape index: {}]  }
   0x1   :  { %17 = vsyncpa [#allocation8], 0 }
   0x2   :  { %18 = vsyncpa [#allocation6], 0  ;;  %s4471_s17 = smov [#allocation4]   ;;  %s4399_s21 = scalar_lea.hbm %s5185_s7, 512 }
   0x3   :  { %s38_s18 = sshll.u32 %s4471_s17, 4  ;;  %p4400_p0 = scmp.ne.s32.totalorder %s5185_s7, %s4399_s21  ;;  %s39_s18 = int_to_ptr.vmem [resolvable:$true] %s38_s18 }
   0x4   :  { %p4403_p1 = scmp.lt.u32.totalorder %s4399_s21, %s5185_s7 }
   0x6   :  { %p4405_p2 = pnand %p4403_p1, %p4400_p0 }
   0x8   :  { %4408 = shalt.err (!%p4405_p2)
}
   0x9   :  { %s4409_s26 = scalar_lea.vmem %s39_s18, 512  ;;  %p4414_p4 = scmp.lt.s32.totalorder %s39_s18, %s39_s18 }
   0xa   :  { %p4410_p3 = scmp.ne.s32.totalorder %s39_s18, %s4409_s26  ;;  %p4415_p5 = scmp.lt.s32.totalorder %s4409_s26, %s4409_s26 }
   0xc   :  { %p4416_p6 = por %p4415_p5, %p4414_p4 }
   0xe   :  { %p4417_p7 = pnand %p4416_p6, %p4410_p3 }
  0x10   :  { %4420 = shalt.err (!%p4417_p7)
}
  0x11   :  { %s4472_s27 = smov 128   ;;  %s4473_s28 = smov 8  }
  0x12   :  { %44 = dma.hbm_to_vmem [thread:$0]  %s5185_s7, 512, %s39_s18, [#allocation5], %s4472_s27, %s4472_s27, %s4473_s28  }
  0x13   :  { %s4474_s12 = smov [#allocation7]   ;;  %s4421_s16 = scalar_lea.hbm %s5187_s9, 512 }
  0x14   :  { %s52_s13 = sshll.u32 %s4474_s12, 4  ;;  %p4422_p8 = scmp.ne.s32.totalorder %s5187_s9, %s4421_s16  ;;  %s53_s13 = int_to_ptr.vmem [resolvable:$true] %s52_s13 }
  0x15   :  { %p4425_p9 = scmp.lt.u32.totalorder %s4421_s16, %s5187_s9 }
  0x17   :  { %p4427_p10 = pnand %p4425_p9, %p4422_p8 }
  0x19   :  { %4430 = shalt.err (!%p4427_p10)
}
  0x1a   :  { %s4431_s22 = scalar_lea.vmem %s53_s13, 512  ;;  %p4436_p12 = scmp.lt.s32.totalorder %s53_s13, %s53_s13 }
  0x1b   :  { %p4432_p11 = scmp.ne.s32.totalorder %s53_s13, %s4431_s22  ;;  %p4437_p13 = scmp.lt.s32.totalorder %s4431_s22, %s4431_s22 }
  0x1d   :  { %p4438_p0 = por %p4437_p13, %p4436_p12 }
  0x1f   :  { %p4439_p1 = pnand %p4438_p0, %p4432_p11 }
  0x21   :  { %4442 = shalt.err (!%p4439_p1)
}
  0x22   :  { %58 = dma.hbm_to_vmem [thread:$0]  %s5187_s9, 512, %s53_s13, [#allocation8], %s4472_s27, %s4472_s27, %s4473_s28  }
  0x23   :  { %4465 = dma.done.wait [#allocation5], 512  }
  0x24   :  { %4466 = vsyncadd [#allocation5], 4294966784 }
  0x25   :  { %4467 = dma.done.wait [#allocation8], 512  }
  0x26   :  { %4468 = vsyncadd [#allocation8], 4294966784  ;;  %v75_v0 = vld [vmem:[%s5179_s1] sm:$0xff]  ;;  %v76_v1 = vld [vmem:[%s5179_s1 + $0x8] sm:$0xff]  ;;  %v4475_v38 = vmov 0.0|0.0   ;;  %vm222_vm0 = vcmask 261120  }
  0x27   :  { %v77_v2 = vld [vmem:[%s5179_s1 + $0x10] sm:$0xff]  ;;  %v4063_v3 = vpack.c.bf16 %v76_v1, %v75_v0  ;;  %v78_v4 = vld [vmem:[%s5179_s1 + $0x18] sm:$0xff]  ;;  %v79_v6 = vld [vmem:[%s5179_s1 + $0x20] sm:$0xff]  ;;  %vm4476_vm1 = vmmov 0   ;;  %v4477_v0 = vmov 0.0   ;;  %vm361_vm2 = vcmask 1041409  }
  0x28   :  { %v4067_v5 = vpack.c.bf16 %v78_v4, %v77_v2  ;;  %v80_v7 = vld [vmem:[%s5179_s1 + $0x28] sm:$0xff]  ;;  %v67_v9 = vld [vmem:[%s5178_s0] sm:$0xff]  ;;  %v81_v10 = vld [vmem:[%s5179_s1 + $0x30] sm:$0xff]  ;;  %vm364_vm3 = vcmask 1042434   ;;  %vm367_vm4 = vcmask 1043459   ;;  %vm370_vm5 = vcmask 1044484  }
  0x29   :  { %4064 = vmatprep.subr.bf16.mxu0 %v4063_v3  ;;  %v4071_v8 = vpack.c.bf16 %v80_v7, %v79_v6  ;;  %v82_v11 = vld [vmem:[%s5179_s1 + $0x38] sm:$0xff]  ;;  %3747 = vmatprep.mubr.f32.mxu0 %v67_v9  ;;  %v211_v12 = vld [vmem:[%s5181_s3] sm:$0xff]  ;;  %v212_v13 = vld [vmem:[%s5181_s3 + $0x8] sm:$0xff]  ;;  %vm373_vm6 = vcmask 1045509   ;;  %vm376_vm7 = vcmask 1046534   ;;  %vm379_vm8 = vcmask 1047559  }
  0x2a   :  { %4066 = vmatpush3.bf16.msra.mxu0 %v4063_v3  ;;  %v4075_v14 = vpack.c.bf16 %v82_v11, %v81_v10  ;;  %v4095_v15 = vpack.c.bf16 %v212_v13, %v211_v12  ;;  %v83_v16 = vld [vmem:[%s5179_s1 + $0x40] sm:$0xff]  ;;  %v84_v17 = vld [vmem:[%s5179_s1 + $0x48] sm:$0xff]  ;;  %v85_v19 = vld [vmem:[%s5179_s1 + $0x50] sm:$0xff]  ;;  %s4479_s12 = smov 32  }
  0x2b   :  { %4068 = vmatprep.subr.bf16.mxu0 %v4067_v5  ;;  %v4079_v18 = vpack.c.bf16 %v84_v17, %v83_v16  ;;  %v86_v20 = vld [vmem:[%s5179_s1 + $0x58] sm:$0xff]  ;;  %v87_v22 = vld [vmem:[%s5179_s1 + $0x60] sm:$0xff]  ;;  %v88_v23 = vld [vmem:[%s5179_s1 + $0x68] sm:$0xff] }
  0x2c   :  { %4255 = vmatprep.subr.bf16.mxu1 %v4095_v15  ;;  %v4083_v21 = vpack.c.bf16 %v86_v20, %v85_v19  ;;  %v4087_v24 = vpack.c.bf16 %v88_v23, %v87_v22  ;;  %v89_v25 = vld [vmem:[%s5179_s1 + $0x70] sm:$0xff]  ;;  %v90_v26 = vld [vmem:[%s5179_s1 + $0x78] sm:$0xff]  ;;  %v68_v28 = vld [vmem:[%s5178_s0 + $0x8] sm:$0xff] }
  0x2d   :  { %4257 = vmatpush3.bf16.msra.mxu1 %v4095_v15  ;;  %v4091_v27 = vpack.c.bf16 %v90_v26, %v89_v25  ;;  %v69_v29 = vld [vmem:[%s5178_s0 + $0x10] sm:$0xff]  ;;  %v70_v30 = vld [vmem:[%s5178_s0 + $0x18] sm:$0xff]  ;;  %v71_v31 = vld [vmem:[%s5178_s0 + $0x20] sm:$0xff] }
  0x2e   :  { %4070 = vmatpush3.bf16.msra.mxu0 %v4067_v5  ;;  %v72_v32 = vld [vmem:[%s5178_s0 + $0x28] sm:$0xff]  ;;  %v73_v33 = vld [vmem:[%s5178_s0 + $0x30] sm:$0xff]  ;;  %v74_v34 = vld [vmem:[%s5178_s0 + $0x38] sm:$0xff] }
  0x2f   :  { %4072 = vmatprep.subr.bf16.mxu0 %v4071_v8  ;;  %v213_v35 = vld [vmem:[%s5181_s3 + $0x10] sm:$0xff]  ;;  %v214_v36 = vld [vmem:[%s5181_s3 + $0x18] sm:$0xff]  ;;  %v3457_v39 = vld [vmem:[%s5180_s2] ss:$0 sm:$0xff] }
  0x30   :  { %v4099_v37 = vpack.c.bf16 %v214_v36, %v213_v35  ;;  %v472_v44 = vld [vmem:[%s5182_s4] sm:$0xff]  ;;  %v473_v45 = vld [vmem:[%s5182_s4 + $0x8] sm:$0xff]  ;;  %v474_v53 = vld [vmem:[%s5182_s4 + $0x10] sm:$0xff] }
  0x31   :  { %v4668_v52 = vpack.c.bf16 %v473_v45, %v472_v44  ;;  %v475_v54 = vld [vmem:[%s5182_s4 + $0x18] sm:$0xff]  ;;  %v3458_v7 = vld [vmem:[%s5183_s5] ss:$0 sm:$0xff]  ;;  %s4478_s5 = smov 64  }
  0x32   :  { %4074 = vmatpush3.bf16.msra.mxu0 %v4071_v8  ;;  %4256 = vmatprep.subr.bf16.mxu1 %v4099_v37  ;;  %v4680_v61 = vpack.c.bf16 %v475_v54, %v474_v53 }
  0x33   :  { %4076 = vmatprep.subr.bf16.mxu0 %v4075_v14  ;;  %4258 = vmatpush3.bf16.msra.mxu1 %v4099_v37 }
  0x34   :  { %4103 = vmatprep.subr.bf16.mxu1 %v4475_v38 }
  0x36   :  { %4078 = vmatpush3.bf16.msra.mxu0 %v4075_v14 }
  0x37   :  { %4080 = vmatprep.subr.bf16.mxu0 %v4079_v18 }
  0x3a   :  { %4082 = vmatpush3.bf16.msra.mxu0 %v4079_v18 }
  0x3b   :  { %4084 = vmatprep.subr.bf16.mxu0 %v4083_v21 }
  0x3e   :  { %4086 = vmatpush3.bf16.msra.mxu0 %v4083_v21 }
  0x3f   :  { %4088 = vmatprep.subr.bf16.mxu0 %v4087_v24 }
  0x42   :  { %4090 = vmatpush3.bf16.msra.mxu0 %v4087_v24 }
  0x43   :  { %4092 = vmatprep.subr.bf16.mxu0 %v4091_v27 }
  0x46   :  { %4094 = vmatpush3.bf16.msra.mxu0 %v4091_v27 }
  0x47   :  { %4096 = vmatprep.subr.bf16.mxu0 %v4095_v15 }
  0x49   :  { %3748 = vmatmul.mubr.f32.vlgmr.msra.gmra.mrb[0].mxu0 %v68_v28 }
  0x4a   :  { %3750 = vmatprep.mubr.f32.mxu0 %v69_v29  ;;  %4098 = vmatpush3.bf16.msra.mxu0 %v4095_v15 }
  0x4b   :  { %4100 = vmatprep.subr.bf16.mxu0 %v4099_v37 }
  0x4d   :  { %3751 = vmatmul.mubr.f32.gmra.mrb[2].mxu0 %v70_v30 }
  0x4e   :  { %3753 = vmatprep.mubr.f32.mxu0 %v71_v31  ;;  %4102 = vmatpush3.bf16.msra.mxu0 %v4099_v37 }
  0x4f   :  { %4121 = vmatprep.subr.bf16.mxu0 %v4475_v38 }
  0x51   :  { %3754 = vmatmul.mubr.f32.gmra.mrb[4].mxu0 %v72_v32 }
  0x52   :  { %3756 = vmatprep.mubr.f32.mxu0 %v73_v33 }
  0x55   :  { %3757 = vmatmul.mubr.f32.gmra.mrb[6].mxu0 %v74_v34 }
 0x11c   :  { %v3749_v40 = vpop.f32.mrb[0].mxu0 }
 0x11d   :  { %v170_v41 = vadd.f32 %v3749_v40, %v3457_v39  ;;  %v164_v42 = vpop.f32.mrb[1].mxu0 }
 0x11e   :  { %v165_v43 = vadd.f32 %v3457_v39, %v164_v42 }
 0x11f   :  { %v204_v48 = vmax.f32 %v170_v41, 0.0 }
 0x120   :  { %v203_v46 = vmax.f32 %v165_v43, 0.0  ;;  %v3752_v47 = vpop.f32.mrb[2].mxu0 }
 0x121   :  { %v180_v49 = vadd.f32 %v3752_v47, %v3457_v39  ;;  %v174_v50 = vpop.f32.mrb[3].mxu0 }
 0x122   :  { %v175_v51 = vadd.f32 %v3457_v39, %v174_v50  ;;  %3767 = vmatprep.mubr.msk.f32.mxu0 %vm222_vm0, %v203_v46 }
 0x123   :  { %3768 = vmatmul.mubr.msk.f32.vlgmr.msra.gmra.mrb[8].mxu0 %vm222_vm0, %v204_v48  ;;  %v206_v57 = vmax.f32 %v180_v49, 0.0 }
 0x124   :  { %v205_v55 = vmax.f32 %v175_v51, 0.0  ;;  %v3755_v56 = vpop.f32.mrb[4].mxu0  ;;  %4123 = vmatpush3.bf16.msra.mxu0 %v4668_v52 }
 0x125   :  { %v190_v58 = vadd.f32 %v3755_v56, %v3457_v39  ;;  %v184_v59 = vpop.f32.mrb[5].mxu0  ;;  %4124 = vmatprep.subr.bf16.mxu0 %v4475_v38 }
 0x126   :  { %v185_v60 = vadd.f32 %v3457_v39, %v184_v59  ;;  %3770 = vmatprep.mubr.msk.f32.mxu0 %vm222_vm0, %v205_v55 }
 0x127   :  { %3771 = vmatmul.mubr.msk.f32.gmra.mrb[10].mxu0 %vm222_vm0, %v206_v57  ;;  %v208_v1 = vmax.f32 %v190_v58, 0.0 }
 0x128   :  { %v207_v62 = vmax.f32 %v185_v60, 0.0  ;;  %v3758_v63 = vpop.f32.mrb[6].mxu0  ;;  %4126 = vmatpush3.bf16.msra.mxu0 %v4680_v61  ;;  %3820 = vmatprep.mubr.msk.f32.mxu0 %vm4476_vm1, %v4477_v0 }
 0x129   :  { %v200_v2 = vadd.f32 %v3758_v63, %v3457_v39  ;;  %v194_v3 = vpop.f32.mrb[7].mxu0  ;;  %4133 = vmatprep.subr.bf16.mxu0 %v4475_v38 }
 0x12a   :  { %v195_v4 = vadd.f32 %v3457_v39, %v194_v3  ;;  %3773 = vmatprep.mubr.msk.f32.mxu1 %vm222_vm0, %v207_v62 }
 0x12b   :  { %3774 = vmatmul.mubr.msk.f32.vlgmr.msra.gmra.mrb[0].mxu1 %vm222_vm0, %v208_v1  ;;  %v210_v6 = vmax.f32 %v200_v2, 0.0 }
 0x12c   :  { %v209_v5 = vmax.f32 %v195_v4, 0.0  ;;  %4105 = vmatpush3.bf16.msra.mxu1 %v4668_v52 }
 0x12d   :  { %4106 = vmatprep.subr.bf16.mxu1 %v4475_v38 }
 0x12e   :  { %3776 = vmatprep.mubr.msk.f32.mxu1 %vm222_vm0, %v209_v5 }
 0x12f   :  { %3777 = vmatmul.mubr.msk.f32.gmra.mrb[2].mxu1 %vm222_vm0, %v210_v6 }
 0x130   :  { %4108 = vmatpush3.bf16.msra.mxu1 %v4680_v61  ;;  %3787 = vmatprep.mubr.msk.f32.mxu1 %vm4476_vm1, %v4477_v0 }
 0x131   :  { %4109 = vmatprep.subr.bf16.mxu1 %v4475_v38 }
 0x133   :  { %3788 = vmatmul.mubr.f32.vlgmr.msra.gmra.mrb[4].mxu1 %v4477_v0 }
 0x134   :  { %3798 = vmatprep.mubr.msk.f32.mxu1 %vm4476_vm1, %v4477_v0 }
 0x1f6   :  { %v3769_v8 = vpop.f32.mrb[8].mxu0 }
 0x1f7   :  { %v319_v9 = vadd.f32 %v3769_v8, %v3458_v7  ;;  %v313_v10 = vpop.f32.mrb[9].mxu0 }
 0x1f8   :  { %v314_v11 = vadd.f32 %v3458_v7, %v313_v10 }
 0x1f9   :  { %v360_v12 = vrot.slane %v319_v9, 7 }
 0x1fa   :  { %458 = vst [vmem:[#allocation2 + $0x31] sm:$0x80] %v314_v11  ;;  %v3772_v13 = vpop.f32.mrb[10].mxu0 }
 0x1fb   :  { %v362_v14 = vsel %vm361_vm2, %v360_v12, %v314_v11  ;;  %v383_v15 = vsel %vm364_vm3, %v360_v12, %v314_v11  ;;  %v394_v16 = vsel %vm367_vm4, %v360_v12, %v314_v11  ;;  %v405_v17 = vsel %vm370_vm5, %v360_v12, %v314_v11  ;;  %v323_v18 = vpop.f32.mrb[11].mxu0 }
 0x1fc   :  { %v416_v19 = vsel %vm373_vm6, %v360_v12, %v314_v11  ;;  %v427_v20 = vsel %vm376_vm7, %v360_v12, %v314_v11  ;;  %v438_v21 = vsel %vm379_vm8, %v360_v12, %v314_v11  ;;  %v329_v22 = vadd.f32 %v3772_v13, %v3458_v7 }
 0x1fd   :  { %447 = vst [vmem:[#allocation2 + $0x2a] sm:$0xc0] %v438_v21  ;;  %v324_v23 = vadd.f32 %v3458_v7, %v323_v18 }
 0x1fe   :  { %v366_v24 = vrot.slane %v329_v22, 5  ;;  %v3775_v25 = vpop.f32.mrb[0].mxu1 }
 0x1ff   :  { %v363_v26 = vrot.slane %v324_v23, 6  ;;  %v339_v27 = vadd.f32 %v3775_v25, %v3458_v7  ;;  %v333_v28 = vpop.f32.mrb[1].mxu1 }
 0x200   :  { %v334_v29 = vadd.f32 %v3458_v7, %v333_v28 }
 0x201   :  { %v365_v30 = vsel %vm364_vm3, %v363_v26, %v362_v14  ;;  %v384_v31 = vsel %vm367_vm4, %v363_v26, %v383_v15  ;;  %v395_v32 = vsel %vm370_vm5, %v363_v26, %v394_v16  ;;  %v406_v33 = vsel %vm373_vm6, %v363_v26, %v405_v17 }
 0x202   :  { %v417_v34 = vsel %vm376_vm7, %v363_v26, %v416_v19  ;;  %v428_v35 = vsel %vm379_vm8, %v363_v26, %v427_v20  ;;  %v439_v36 = vsel %vm361_vm2, %v366_v24, %v363_v26  ;;  %v449_v37 = vsel %vm361_vm2, %v363_v26, %v360_v12  ;;  %v3778_v39 = vpop.f32.mrb[2].mxu1 }
 0x203   :  { %436 = vst [vmem:[#allocation2 + $0x23] sm:$0xe0] %v428_v35  ;;  %v372_v40 = vrot.slane %v339_v27, 3  ;;  %v368_v41 = vsel %vm367_vm4, %v366_v24, %v365_v30  ;;  %v369_v42 = vrot.slane %v334_v29, 4  ;;  %v385_v43 = vsel %vm370_vm5, %v366_v24, %v384_v31  ;;  %v343_v44 = vpop.f32.mrb[3].mxu1  ;;  %v576_v35 = vld [vmem:[%s5184_s6 + $0x10] sm:$0xff] }
 0x204   :  { %v396_v45 = vsel %vm373_vm6, %v366_v24, %v395_v32  ;;  %v407_v46 = vsel %vm376_vm7, %v366_v24, %v406_v33  ;;  %v450_v47 = vsel %vm364_vm3, %v366_v24, %v449_v37  ;;  %v349_v48 = vadd.f32 %v3778_v39, %v3458_v7  ;;  %v574_v33 = vld [vmem:[%s5184_s6] sm:$0xff]  ;;  %v577_v37 = vld [vmem:[%s5184_s6 + $0x18] sm:$0xff] }
 0x205   :  { %v371_v49 = vsel %vm370_vm5, %v369_v42, %v368_v41  ;;  %v386_v50 = vsel %vm373_vm6, %v369_v42, %v385_v43  ;;  %v397_v51 = vsel %vm376_vm7, %v369_v42, %v396_v45  ;;  %v408_v53 = vsel %vm379_vm8, %v369_v42, %v407_v46  ;;  %v467_v43 = vld [vmem:[#allocation4] sm:$0xff]  ;;  %v469_v46 = vld [vmem:[#allocation4 + $0x10] sm:$0xff] }
 0x206   :  { %v419_v54 = vsel %vm361_vm2, %v372_v40, %v369_v42  ;;  %v429_v55 = vsel %vm361_vm2, %v369_v42, %v366_v24  ;;  %v440_v56 = vsel %vm364_vm3, %v369_v42, %v439_v36  ;;  %v451_v57 = vsel %vm367_vm4, %v369_v42, %v450_v47  ;;  %414 = vst [vmem:[#allocation2 + $0x15] sm:$0xf8] %v408_v53  ;;  %v545_v58 = vpop.f32.mrb[4].mxu1  ;;  %v470_v47 = vld [vmem:[#allocation4 + $0x18] sm:$0xff] }
 0x207   :  { %v378_v59 = vrot.slane %v349_v48, 1  ;;  %v344_v60 = vadd.f32 %v3458_v7, %v343_v44  ;;  %v374_v62 = vsel %vm373_vm6, %v372_v40, %v371_v49  ;;  %v387_v63 = vsel %vm376_vm7, %v372_v40, %v386_v50  ;;  %v3789_v1 = vpop.f32.mrb[5].mxu1  ;;  %v468_v44 = vld [vmem:[#allocation4 + $0x8] sm:$0xff] }
 0x208   :  { %v430_v2 = vsel %vm364_vm3, %v372_v40, %v429_v55  ;;  %v441_v3 = vsel %vm367_vm4, %v372_v40, %v440_v56  ;;  %v452_v4 = vsel %vm370_vm5, %v372_v40, %v451_v57  ;;  %v398_v5 = vsel %vm379_vm8, %v372_v40, %v397_v51  ;;  %v4807_v57 = vld [vmem:[%s5186_s8] ss:$0 sm:$0xff] }
 0x209   :  { %393 = vst [vmem:[#allocation2 + $0xf] sm:$0x1] %v378_v59  ;;  %v375_v6 = vrot.slane %v344_v60, 2  ;;  %403 = vst [vmem:[#allocation2 + $0xe] sm:$0xfc] %v398_v5  ;;  %v418_v8 = vsel %vm379_vm8, %v366_v24, %v417_v34  ;;  %v575_v34 = vld [vmem:[%s5184_s6 + $0x8] sm:$0xff]  ;;  %v4772_v39 = vpack.c.bf16 %v577_v37, %v576_v35  ;;  %v4779_v45 = vpack.c.bf16 %v468_v44, %v467_v43 }
 0x20a   :  { %425 = vst [vmem:[#allocation2 + $0x1c] sm:$0xf0] %v418_v8  ;;  %v4766_v36 = vpack.c.bf16 %v575_v34, %v574_v33  ;;  %v4784_v49 = vpack.c.bf16 %v470_v47, %v469_v46 }
 0x20b   :  { %v377_v7 = vsel %vm376_vm7, %v375_v6, %v374_v62  ;;  %v388_v9 = vsel %vm379_vm8, %v375_v6, %v387_v63  ;;  %v399_v10 = vsel %vm361_vm2, %v378_v59, %v375_v6  ;;  %v409_v11 = vsel %vm361_vm2, %v375_v6, %v372_v40 }
 0x20c   :  { %v420_v12 = vsel %vm364_vm3, %v375_v6, %v419_v54  ;;  %v431_v13 = vsel %vm367_vm4, %v375_v6, %v430_v2  ;;  %v442_v14 = vsel %vm370_vm5, %v375_v6, %v441_v3  ;;  %v453_v15 = vsel %vm373_vm6, %v375_v6, %v452_v4  ;;  %392 = vst [vmem:[#allocation2 + $0x7] sm:$0xfe] %v388_v9 }
 0x20d   :  { %404 = vst [vmem:[#allocation2 + $0x16] sm:$0x3] %v399_v10  ;;  %v380_v16 = vsel %vm379_vm8, %v378_v59, %v377_v7  ;;  %v410_v17 = vsel %vm364_vm3, %v378_v59, %v409_v11  ;;  %v421_v18 = vsel %vm367_vm4, %v378_v59, %v420_v12  ;;  %v432_v19 = vsel %vm370_vm5, %v378_v59, %v431_v13 }
 0x20e   :  { %v549_v20 = vadd.f32 %v545_v58, %v380_v16  ;;  %415 = vst [vmem:[#allocation2 + $0x1d] sm:$0x7] %v410_v17  ;;  %426 = vst [vmem:[#allocation2 + $0x24] sm:$0xf] %v421_v18  ;;  %v443_v21 = vsel %vm373_vm6, %v378_v59, %v442_v14  ;;  %v454_v22 = vsel %vm376_vm7, %v378_v59, %v453_v15  ;;  %4111 = vmatpush3.bf16.msra.mxu1 %v4766_v36 }
 0x20f   :  { %437 = vst [vmem:[#allocation2 + $0x2b] sm:$0x1f] %v432_v19  ;;  %448 = vst [vmem:[#allocation2 + $0x32] sm:$0x3f] %v443_v21  ;;  %4112 = vmatprep.subr.bf16.mxu1 %v4475_v38 }
 0x210   :  { %459 = vst [vmem:[#allocation2 + $0x39] sm:$0x7f] %v454_v22  ;;  %4270 = vtanh.f32 %v549_v20  ;;  %v3468_v24 = vmul.f32 -1.442695, %v549_v20 }
 0x212   :  { %4272 = vpow2.f32 %v3468_v24  ;;  %4114 = vmatpush3.bf16.msra.mxu1 %v4772_v39 }
 0x213   :  { %4115 = vmatprep.subr.bf16.mxu1 %v4475_v38  ;;  %v757_v51 = vld [vmem:[#allocation2 + $0x8] sm:$0xff] }
 0x21a   :  { %v4271_v23 = vpop.eup %4270 }
 0x21b   :  { %559 = vrot.lane.b32.xlu0 %v4271_v23, %s4478_s5 }
 0x21c   :  { %v4273_v25 = vpop.eup %4272 }
 0x21d   :  { %v553_v26 = vadd.f32 1.0, %v4273_v25 }
 0x21f   :  { %4274 = vrcp.f32 %v553_v26 }
 0x229   :  { %v4275_v27 = vpop.eup %4274 }
 0x22a   :  { %v557_v30 = vmul.f32 0.0, %v4275_v27 }
 0x28d   :  { %v560_v28 = vpop.permute.xlu0 %559 }
 0x28e   :  { %v562_v29 = vmul.f32 %v4275_v27, %v560_v28 }
 0x290   :  { %564 = vrot.lane.b32.xlu0 %v562_v29, %s4479_s12 }
 0x302   :  { %v565_v31 = vpop.permute.xlu0 %564 }
 0x303   :  { %v4754_v32 = vadd.f32 %v565_v31, %v557_v30  ;;  %v1043_v30 = vld [vmem:[#allocation2 + $0x10] sm:$0xff] }
 0x305   :  { %4276 = vtanh.f32 %v4754_v32 }
 0x30f   :  { %v4277_v40 = vpop.eup %4276 }
 0x310   :  { %570 = vrot.lane.b32.xlu1 %v4277_v40, %s4478_s5 }
 0x382   :  { %v571_v41 = vpop.permute.xlu1 %570 }
 0x383   :  { %v573_v42 = vmul.f32 %v4275_v27, %v571_v41 }
 0x385   :  { %579 = vrot.lane.b32.xlu1 %v573_v42, %s4479_s12 }
 0x3f7   :  { %v580_v48 = vpop.permute.xlu1 %579 }
 0x3f8   :  { %3799 = vmatmul.mubr.msk.f32.vlgmr.msra.gmra.mrb[6].mxu1 %vm222_vm0, %v580_v48  ;;  %3821 = vmatmul.mubr.msk.f32.vlgmr.msra.gmra.mrb[12].mxu0 %vm222_vm0, %v580_v48 }
 0x3f9   :  { %4117 = vmatpush3.bf16.msra.mxu1 %v4779_v45  ;;  %3809 = vmatprep.mubr.msk.f32.mxu1 %vm4476_vm1, %v4477_v0 }
 0x3fa   :  { %4118 = vmatprep.subr.bf16.mxu1 %v4475_v38  ;;  %4135 = vmatpush3.bf16.msra.mxu0 %v4779_v45 }
 0x3fb   :  { %4136 = vmatprep.subr.bf16.mxu0 %v4475_v38  ;;  %3842 = vmatprep.mubr.msk.f32.mxu0 %vm4476_vm1, %v4477_v0 }
 0x3fd   :  { %4120 = vmatpush3.bf16.msra.mxu1 %v4784_v49 }
 0x3fe   :  { %4127 = vmatprep.subr.bf16.mxu1 %v4475_v38  ;;  %4138 = vmatpush3.bf16.msra.mxu0 %v4784_v49 }
 0x3ff   :  { %4145 = vmatprep.subr.bf16.mxu0 %v4475_v38 }
 0x400   :  { %3810 = vmatmul.mubr.f32.vlgmr.msra.gmra.mrb[8].mxu1 %v4477_v0 }
 0x401   :  { %4129 = vmatpush3.bf16.msra.mxu1 %v4766_v36  ;;  %3831 = vmatprep.mubr.msk.f32.mxu1 %vm4476_vm1, %v4477_v0 }
 0x402   :  { %4130 = vmatprep.subr.bf16.mxu1 %v4475_v38 }
 0x405   :  { %4132 = vmatpush3.bf16.msra.mxu1 %v4772_v39 }
 0x406   :  { %4139 = vmatprep.subr.bf16.mxu1 %v4475_v38 }
 0x4cb   :  { %v649_v50 = vpop.f32.mrb[6].mxu1  ;;  %v828_v53 = vpop.f32.mrb[12].mxu0 }
 0x4cc   :  { %v832_v54 = vadd.f32 %v828_v53, %v757_v51  ;;  %v3800_v55 = vpop.f32.mrb[7].mxu1  ;;  %v3822_v56 = vpop.f32.mrb[13].mxu0 }
 0x4ce   :  { %4278 = vtanh.f32 %v832_v54  ;;  %v3472_v2 = vmul.f32 -1.442695, %v832_v54 }
 0x4d3   :  { %v719_v58 = vpop.f32.mrb[8].mxu1 }
 0x4d4   :  { %v720_v59 = vadd.f32 %v719_v58, %v649_v50  ;;  %v3811_v60 = vpop.f32.mrb[9].mxu1 }
 0x4d6   :  { %v723_v62 = vadd.f32 %v4807_v57, %v720_v59 }
 0x4d8   :  { %v4279_v63 = vpop.eup %4278  ;;  %4280 = vtanh.f32 %v723_v62  ;;  %v3470_v3 = vmul.f32 -1.442695, %v723_v62 }
 0x4d9   :  { %842 = vrot.lane.b32.xlu0 %v4279_v63, %s4478_s5  ;;  %4282 = vpow2.f32 %v3472_v2 }
 0x4da   :  { %4284 = vpow2.f32 %v3470_v3 }
 0x4e2   :  { %v4281_v1 = vpop.eup %4280 }
 0x4e3   :  { %733 = vrot.lane.b32.xlu1 %v4281_v1, %s4478_s5  ;;  %v4283_v4 = vpop.eup %4282 }
 0x4e4   :  { %v836_v5 = vadd.f32 1.0, %v4283_v4  ;;  %v4285_v6 = vpop.eup %4284 }
 0x4e5   :  { %v727_v8 = vadd.f32 1.0, %v4285_v6 }
 0x4e6   :  { %4286 = vrcp.f32 %v836_v5 }
 0x4e7   :  { %4288 = vrcp.f32 %v727_v8 }
 0x4f0   :  { %v4287_v7 = vpop.eup %4286 }
 0x4f1   :  { %v4289_v11 = vpop.eup %4288  ;;  %v840_v14 = vmul.f32 %v4287_v7, %v4754_v32 }
 0x4f2   :  { %v731_v17 = vmul.f32 0.0, %v4289_v11 }
 0x54b   :  { %v843_v9 = vpop.permute.xlu0 %842 }
 0x54c   :  { %v845_v10 = vmul.f32 %v4287_v7, %v843_v9 }
 0x54e   :  { %847 = vrot.lane.b32.xlu0 %v845_v10, %s4479_s12 }
 0x555   :  { %v734_v12 = vpop.permute.xlu1 %733 }
 0x556   :  { %v736_v13 = vmul.f32 %v4289_v11, %v734_v12 }
 0x558   :  { %738 = vrot.lane.b32.xlu1 %v736_v13, %s4479_s12 }
 0x5c0   :  { %v848_v15 = vpop.permute.xlu0 %847 }
 0x5c1   :  { %v4815_v16 = vadd.f32 %v848_v15, %v840_v14 }
 0x5c3   :  { %4290 = vtanh.f32 %v4815_v16 }
 0x5ca   :  { %v739_v18 = vpop.permute.xlu1 %738 }
 0x5cb   :  { %v4818_v19 = vadd.f32 %v739_v18, %v731_v17  ;;  %v1329_v17 = vld [vmem:[#allocation2 + $0x18] sm:$0xff] }
 0x5cd   :  { %v4291_v20 = vpop.eup %4290  ;;  %4292 = vtanh.f32 %v4818_v19 }
 0x5ce   :  { %853 = vrot.lane.b32.xlu0 %v4291_v20, %s4478_s5 }
 0x5d7   :  { %v4293_v21 = vpop.eup %4292 }
 0x5d8   :  { %744 = vrot.lane.b32.xlu1 %v4293_v21, %s4478_s5 }
 0x640   :  { %v854_v22 = vpop.permute.xlu0 %853 }
 0x641   :  { %v856_v23 = vmul.f32 %v4287_v7, %v854_v22 }
 0x643   :  { %862 = vrot.lane.b32.xlu0 %v856_v23, %s4479_s12 }
 0x64a   :  { %v745_v24 = vpop.permute.xlu1 %744 }
 0x64b   :  { %v747_v25 = vmul.f32 %v4289_v11, %v745_v24 }
 0x64d   :  { %749 = vrot.lane.b32.xlu1 %v747_v25, %s4479_s12 }
 0x6b5   :  { %v863_v26 = vpop.permute.xlu0 %862 }
 0x6b6   :  { %3832 = vmatmul.mubr.msk.f32.vlgmr.msra.gmra.mrb[10].mxu1 %vm222_vm0, %v863_v26 }
 0x6b7   :  { %4141 = vmatpush3.bf16.msra.mxu1 %v4668_v52  ;;  %3853 = vmatprep.mubr.msk.f32.mxu1 %vm4476_vm1, %v4477_v0 }
 0x6b8   :  { %4142 = vmatprep.subr.bf16.mxu1 %v4475_v38 }
 0x6bb   :  { %4144 = vmatpush3.bf16.msra.mxu1 %v4680_v61 }
 0x6bc   :  { %4151 = vmatprep.subr.bf16.mxu1 %v4475_v38 }
 0x6be   :  { %3854 = vmatmul.mubr.msk.f32.vlgmr.msra.gmra.mrb[12].mxu1 %vm222_vm0, %v863_v26 }
 0x6bf   :  { %v750_v27 = vpop.permute.xlu1 %749  ;;  %4153 = vmatpush3.bf16.msra.mxu1 %v4779_v45  ;;  %3875 = vmatprep.mubr.msk.f32.mxu1 %vm4476_vm1, %v4477_v0 }
 0x6c0   :  { %752 = vst.msk [vmem:[#allocation3] sm:$0xff] %vm222_vm0, %v750_v27  ;;  %3843 = vmatmul.mubr.msk.f32.vlgmr.msra.gmra.mrb[14].mxu0 %vm222_vm0, %v750_v27  ;;  %4154 = vmatprep.subr.bf16.mxu1 %v4475_v38 }
 0x6c1   :  { %4147 = vmatpush3.bf16.msra.mxu0 %v4766_v36  ;;  %3864 = vmatprep.mubr.msk.f32.mxu0 %vm4476_vm1, %v4477_v0 }
 0x6c2   :  { %4148 = vmatprep.subr.bf16.mxu0 %v4475_v38 }
 0x6c3   :  { %4156 = vmatpush3.bf16.msra.mxu1 %v4784_v49 }
 0x6c4   :  { %4163 = vmatprep.subr.bf16.mxu1 %v4475_v38 }
 0x6c5   :  { %4150 = vmatpush3.bf16.msra.mxu0 %v4772_v39 }
 0x6c6   :  { %4157 = vmatprep.subr.bf16.mxu0 %v4475_v38 }
 0x789   :  { %v932_v28 = vpop.f32.mrb[10].mxu1 }
 0x78a   :  { %v3833_v29 = vpop.f32.mrb[11].mxu1 }
 0x791   :  { %v1114_v31 = vpop.f32.mrb[12].mxu1 }
 0x792   :  { %v1118_v32 = vadd.f32 %v1114_v31, %v1043_v30  ;;  %v3855_v33 = vpop.f32.mrb[13].mxu1 }
 0x793   :  { %v1004_v34 = vpop.f32.mrb[14].mxu0 }
 0x794   :  { %4294 = vtanh.f32 %v1118_v32  ;;  %v1005_v35 = vadd.f32 %v1004_v34, %v932_v28  ;;  %v3844_v37 = vpop.f32.mrb[15].mxu0  ;;  %v3477_v43 = vmul.f32 -1.442695, %v1118_v32 }
 0x796   :  { %v1008_v40 = vadd.f32 %v4807_v57, %v1005_v35 }
 0x798   :  { %4296 = vtanh.f32 %v1008_v40  ;;  %v3475_v44 = vmul.f32 -1.442695, %v1008_v40 }
 0x799   :  { %4298 = vpow2.f32 %v3477_v43 }
 0x79a   :  { %4300 = vpow2.f32 %v3475_v44 }
 0x79e   :  { %v4295_v41 = vpop.eup %4294 }
 0x79f   :  { %1128 = vrot.lane.b32.xlu0 %v4295_v41, %s4478_s5 }
 0x7a2   :  { %v4297_v42 = vpop.eup %4296 }
 0x7a3   :  { %1018 = vrot.lane.b32.xlu1 %v4297_v42, %s4478_s5  ;;  %v4299_v46 = vpop.eup %4298 }
 0x7a4   :  { %v1122_v47 = vadd.f32 1.0, %v4299_v46  ;;  %v4301_v48 = vpop.eup %4300 }
 0x7a5   :  { %v1012_v50 = vadd.f32 1.0, %v4301_v48 }
 0x7a6   :  { %4302 = vrcp.f32 %v1122_v47 }
 0x7a7   :  { %4304 = vrcp.f32 %v1012_v50 }
 0x7b0   :  { %v4303_v51 = vpop.eup %4302 }
 0x7b1   :  { %v4305_v55 = vpop.eup %4304  ;;  %v1126_v59 = vmul.f32 %v4303_v51, %v4815_v16 }
 0x7b2   :  { %v1016_v63 = vmul.f32 %v4305_v55, %v4818_v19 }
 0x811   :  { %v1129_v53 = vpop.permute.xlu0 %1128 }
 0x812   :  { %v1131_v54 = vmul.f32 %v4303_v51, %v1129_v53 }
 0x814   :  { %1133 = vrot.lane.b32.xlu0 %v1131_v54, %s4479_s12 }
 0x815   :  { %v1019_v56 = vpop.permute.xlu1 %1018 }
 0x816   :  { %v1021_v58 = vmul.f32 %v4305_v55, %v1019_v56 }
 0x818   :  { %1023 = vrot.lane.b32.xlu1 %v1021_v58, %s4479_s12 }
 0x886   :  { %v1134_v60 = vpop.permute.xlu0 %1133 }
 0x887   :  { %v4853_v62 = vadd.f32 %v1134_v60, %v1126_v59 }
 0x889   :  { %4306 = vtanh.f32 %v4853_v62 }
 0x88a   :  { %v1024_v1 = vpop.permute.xlu1 %1023 }
 0x88b   :  { %v4857_v2 = vadd.f32 %v1024_v1, %v1016_v63  ;;  %v1615_v63 = vld [vmem:[#allocation2 + $0x20] sm:$0xff] }
 0x88d   :  { %4308 = vtanh.f32 %v4857_v2 }
 0x893   :  { %v4307_v3 = vpop.eup %4306 }
 0x894   :  { %1139 = vrot.lane.b32.xlu0 %v4307_v3, %s4478_s5 }
 0x897   :  { %v4309_v4 = vpop.eup %4308 }
 0x898   :  { %1029 = vrot.lane.b32.xlu1 %v4309_v4, %s4478_s5 }
 0x906   :  { %v1140_v5 = vpop.permute.xlu0 %1139 }
 0x907   :  { %v1142_v6 = vmul.f32 %v4303_v51, %v1140_v5 }
 0x909   :  { %1148 = vrot.lane.b32.xlu0 %v1142_v6, %s4479_s12 }
 0x90a   :  { %v1030_v8 = vpop.permute.xlu1 %1029 }
 0x90b   :  { %v1032_v7 = vmul.f32 %v4305_v55, %v1030_v8 }
 0x90d   :  { %1034 = vrot.lane.b32.xlu1 %v1032_v7, %s4479_s12 }
 0x97b   :  { %v1149_v9 = vpop.permute.xlu0 %1148 }
 0x97c   :  { %3865 = vmatmul.mubr.msk.f32.vlgmr.msra.gmra.mrb[16].mxu0 %vm222_vm0, %v1149_v9 }
 0x97d   :  { %4159 = vmatpush3.bf16.msra.mxu0 %v4668_v52  ;;  %3886 = vmatprep.mubr.msk.f32.mxu0 %vm4476_vm1, %v4477_v0 }
 0x97e   :  { %4160 = vmatprep.subr.bf16.mxu0 %v4475_v38 }
 0x97f   :  { %v1035_v10 = vpop.permute.xlu1 %1034 }
 0x980   :  { %1038 = vst.msk [vmem:[#allocation3 + $0x8] sm:$0xff] %vm222_vm0, %v1035_v10  ;;  %3876 = vmatmul.mubr.msk.f32.vlgmr.msra.gmra.mrb[14].mxu1 %vm222_vm0, %v1035_v10 }
 0x981   :  { %4162 = vmatpush3.bf16.msra.mxu0 %v4680_v61  ;;  %4165 = vmatpush3.bf16.msra.mxu1 %v4766_v36 }
 0x982   :  { %4169 = vmatprep.subr.bf16.mxu0 %v4475_v38  ;;  %4166 = vmatprep.subr.bf16.mxu1 %v4475_v38 }
 0x983   :  { %3897 = vmatprep.mubr.msk.f32.mxu1 %vm4476_vm1, %v4477_v0 }
 0x984   :  { %3887 = vmatmul.mubr.msk.f32.vlgmr.msra.gmra.mrb[18].mxu0 %vm222_vm0, %v1149_v9 }
 0x985   :  { %4171 = vmatpush3.bf16.msra.mxu0 %v4779_v45  ;;  %4168 = vmatpush3.bf16.msra.mxu1 %v4772_v39 }
 0x986   :  { %4172 = vmatprep.subr.bf16.mxu0 %v4475_v38  ;;  %3908 = vmatprep.mubr.msk.f32.mxu0 %vm4476_vm1, %v4477_v0 }
 0x987   :  { %4175 = vmatprep.subr.bf16.mxu1 %v4475_v38 }
 0x989   :  { %4174 = vmatpush3.bf16.msra.mxu0 %v4784_v49 }
 0x98a   :  { %4181 = vmatprep.subr.bf16.mxu0 %v4475_v38 }
 0xa4f   :  { %v1218_v11 = vpop.f32.mrb[16].mxu0 }
 0xa50   :  { %v3866_v12 = vpop.f32.mrb[17].mxu0 }
 0xa53   :  { %v1290_v13 = vpop.f32.mrb[14].mxu1 }
 0xa54   :  { %v1291_v14 = vadd.f32 %v1290_v13, %v1218_v11  ;;  %v3877_v15 = vpop.f32.mrb[15].mxu1 }
 0xa56   :  { %v1294_v16 = vadd.f32 %v4807_v57, %v1291_v14 }
 0xa57   :  { %v1400_v18 = vpop.f32.mrb[18].mxu0 }
 0xa58   :  { %4310 = vtanh.f32 %v1294_v16  ;;  %v1404_v19 = vadd.f32 %v1400_v18, %v1329_v17  ;;  %v3888_v20 = vpop.f32.mrb[19].mxu0  ;;  %v3480_v23 = vmul.f32 -1.442695, %v1294_v16 }
 0xa5a   :  { %4312 = vtanh.f32 %v1404_v19  ;;  %v3482_v24 = vmul.f32 -1.442695, %v1404_v19 }
 0xa5b   :  { %4314 = vpow2.f32 %v3480_v23 }
 0xa5c   :  { %4316 = vpow2.f32 %v3482_v24 }
 0xa62   :  { %v4311_v21 = vpop.eup %4310 }
 0xa63   :  { %1304 = vrot.lane.b32.xlu1 %v4311_v21, %s4478_s5 }
 0xa64   :  { %v4313_v22 = vpop.eup %4312 }
 0xa65   :  { %1414 = vrot.lane.b32.xlu0 %v4313_v22, %s4478_s5  ;;  %v4315_v25 = vpop.eup %4314 }
 0xa66   :  { %v4317_v26 = vpop.eup %4316  ;;  %v1298_v27 = vadd.f32 1.0, %v4315_v25 }
 0xa67   :  { %v1408_v28 = vadd.f32 1.0, %v4317_v26 }
 0xa68   :  { %4318 = vrcp.f32 %v1298_v27 }
 0xa69   :  { %4320 = vrcp.f32 %v1408_v28 }
 0xa72   :  { %v4319_v29 = vpop.eup %4318 }
 0xa73   :  { %v4321_v32 = vpop.eup %4320  ;;  %v1302_v35 = vmul.f32 %v4319_v29, %v4857_v2 }
 0xa74   :  { %v1412_v41 = vmul.f32 %v4321_v32, %v4853_v62 }
 0xad5   :  { %v1305_v30 = vpop.permute.xlu1 %1304 }
 0xad6   :  { %v1307_v31 = vmul.f32 %v4319_v29, %v1305_v30 }
 0xad7   :  { %v1415_v33 = vpop.permute.xlu0 %1414 }
 0xad8   :  { %1309 = vrot.lane.b32.xlu1 %v1307_v31, %s4479_s12  ;;  %v1417_v34 = vmul.f32 %v4321_v32, %v1415_v33 }
 0xada   :  { %1419 = vrot.lane.b32.xlu0 %v1417_v34, %s4479_s12  ;;  %v1901_v34 = vld [vmem:[#allocation2 + $0x28] sm:$0xff] }
 0xb4a   :  { %v1310_v37 = vpop.permute.xlu1 %1309 }
 0xb4b   :  { %v4892_v40 = vadd.f32 %v1310_v37, %v1302_v35 }
 0xb4c   :  { %v1420_v42 = vpop.permute.xlu0 %1419 }
 0xb4d   :  { %4322 = vtanh.f32 %v4892_v40  ;;  %v4896_v43 = vadd.f32 %v1420_v42, %v1412_v41 }
 0xb4f   :  { %4324 = vtanh.f32 %v4896_v43 }
 0xb57   :  { %v4323_v44 = vpop.eup %4322 }
 0xb58   :  { %1315 = vrot.lane.b32.xlu1 %v4323_v44, %s4478_s5 }
 0xb59   :  { %v4325_v46 = vpop.eup %4324 }
 0xb5a   :  { %1425 = vrot.lane.b32.xlu0 %v4325_v46, %s4478_s5 }
 0xbca   :  { %v1316_v47 = vpop.permute.xlu1 %1315 }
 0xbcb   :  { %v1318_v48 = vmul.f32 %v4319_v29, %v1316_v47 }
 0xbcc   :  { %v1426_v50 = vpop.permute.xlu0 %1425 }
 0xbcd   :  { %1320 = vrot.lane.b32.xlu1 %v1318_v48, %s4479_s12  ;;  %v1428_v51 = vmul.f32 %v4321_v32, %v1426_v50 }
 0xbcf   :  { %1434 = vrot.lane.b32.xlu0 %v1428_v51, %s4479_s12 }
 0xc3f   :  { %v1321_v53 = vpop.permute.xlu1 %1320 }
 0xc40   :  { %1324 = vst.msk [vmem:[#allocation3 + $0x10] sm:$0xff] %vm222_vm0, %v1321_v53  ;;  %3909 = vmatmul.mubr.msk.f32.vlgmr.msra.gmra.mrb[20].mxu0 %vm222_vm0, %v1321_v53 }
 0xc41   :  { %4183 = vmatpush3.bf16.msra.mxu0 %v4766_v36  ;;  %3930 = vmatprep.mubr.msk.f32.mxu0 %vm4476_vm1, %v4477_v0  ;;  %v1435_v54 = vpop.permute.xlu0 %1434 }
 0xc42   :  { %4184 = vmatprep.subr.bf16.mxu0 %v4475_v38  ;;  %3898 = vmatmul.mubr.msk.f32.vlgmr.msra.gmra.mrb[16].mxu1 %vm222_vm0, %v1435_v54 }
 0xc43   :  { %4177 = vmatpush3.bf16.msra.mxu1 %v4668_v52  ;;  %3919 = vmatprep.mubr.msk.f32.mxu1 %vm4476_vm1, %v4477_v0 }
 0xc44   :  { %4178 = vmatprep.subr.bf16.mxu1 %v4475_v38 }
 0xc45   :  { %4186 = vmatpush3.bf16.msra.mxu0 %v4772_v39 }
 0xc46   :  { %4193 = vmatprep.subr.bf16.mxu0 %v4475_v38 }
 0xc47   :  { %4180 = vmatpush3.bf16.msra.mxu1 %v4680_v61 }
 0xc48   :  { %4187 = vmatprep.subr.bf16.mxu1 %v4475_v38 }
 0xc4a   :  { %3920 = vmatmul.mubr.msk.f32.vlgmr.msra.gmra.mrb[18].mxu1 %vm222_vm0, %v1435_v54 }
 0xc4b   :  { %4189 = vmatpush3.bf16.msra.mxu1 %v4779_v45  ;;  %3941 = vmatprep.mubr.msk.f32.mxu1 %vm4476_vm1, %v4477_v0 }
 0xc4c   :  { %4190 = vmatprep.subr.bf16.mxu1 %v4475_v38 }
 0xc4f   :  { %4192 = vmatpush3.bf16.msra.mxu1 %v4784_v49 }
 0xc50   :  { %4199 = vmatprep.subr.bf16.mxu1 %v4475_v38 }
 0xd13   :  { %v1576_v55 = vpop.f32.mrb[20].mxu0 }
 0xd14   :  { %v3910_v56 = vpop.f32.mrb[21].mxu0 }
 0xd15   :  { %v1504_v58 = vpop.f32.mrb[16].mxu1 }
 0xd16   :  { %v1577_v59 = vadd.f32 %v1576_v55, %v1504_v58  ;;  %v3899_v60 = vpop.f32.mrb[17].mxu1 }
 0xd18   :  { %v1580_v62 = vadd.f32 %v4807_v57, %v1577_v59 }
 0xd1a   :  { %4326 = vtanh.f32 %v1580_v62  ;;  %v3485_v6 = vmul.f32 -1.442695, %v1580_v62 }
 0xd1d   :  { %v1686_v1 = vpop.f32.mrb[18].mxu1 }
 0xd1e   :  { %v1690_v2 = vadd.f32 %v1686_v1, %v1615_v63  ;;  %v3921_v3 = vpop.f32.mrb[19].mxu1 }
 0xd20   :  { %4328 = vtanh.f32 %v1690_v2  ;;  %v3487_v8 = vmul.f32 -1.442695, %v1690_v2 }
 0xd21   :  { %4330 = vpow2.f32 %v3485_v6 }
 0xd22   :  { %4332 = vpow2.f32 %v3487_v8 }
 0xd24   :  { %v4327_v4 = vpop.eup %4326 }
 0xd25   :  { %1590 = vrot.lane.b32.xlu1 %v4327_v4, %s4478_s5 }
 0xd2a   :  { %v4329_v5 = vpop.eup %4328 }
 0xd2b   :  { %1700 = vrot.lane.b32.xlu0 %v4329_v5, %s4478_s5  ;;  %v4331_v7 = vpop.eup %4330 }
 0xd2c   :  { %v1584_v9 = vadd.f32 1.0, %v4331_v7  ;;  %v4333_v10 = vpop.eup %4332 }
 0xd2d   :  { %v1694_v11 = vadd.f32 1.0, %v4333_v10  ;;  %v2188_v10 = vld [vmem:[%s5182_s4] sm:$0xff] }
 0xd2e   :  { %4334 = vrcp.f32 %v1584_v9 }
 0xd2f   :  { %4336 = vrcp.f32 %v1694_v11  ;;  %v2189_v11 = vld [vmem:[%s5182_s4 + $0x8] sm:$0xff] }
 0xd38   :  { %v4335_v12 = vpop.eup %4334 }
 0xd39   :  { %v4337_v15 = vpop.eup %4336  ;;  %v1588_v18 = vmul.f32 %v4335_v12, %v4892_v40 }
 0xd3a   :  { %v1698_v21 = vmul.f32 %v4337_v15, %v4896_v43 }
 0xd97   :  { %v1591_v13 = vpop.permute.xlu1 %1590 }
 0xd98   :  { %v1593_v14 = vmul.f32 %v4335_v12, %v1591_v13  ;;  %v2190_v13 = vld [vmem:[%s5182_s4 + $0x10] sm:$0xff] }
 0xd9a   :  { %1595 = vrot.lane.b32.xlu1 %v1593_v14, %s4479_s12  ;;  %v2191_v14 = vld [vmem:[%s5182_s4 + $0x18] sm:$0xff] }
 0xd9d   :  { %v1701_v16 = vpop.permute.xlu0 %1700 }
 0xd9e   :  { %v1703_v17 = vmul.f32 %v4337_v15, %v1701_v16  ;;  %v5001_v16 = vpack.c.bf16 %v2191_v14, %v2190_v13 }
 0xda0   :  { %1705 = vrot.lane.b32.xlu0 %v1703_v17, %s4479_s12 }
 0xe0c   :  { %v1596_v19 = vpop.permute.xlu1 %1595 }
 0xe0d   :  { %v4931_v20 = vadd.f32 %v1596_v19, %v1588_v18 }
 0xe0f   :  { %4338 = vtanh.f32 %v4931_v20 }
 0xe12   :  { %v1706_v22 = vpop.permute.xlu0 %1705 }
 0xe13   :  { %v4935_v23 = vadd.f32 %v1706_v22, %v1698_v21 }
 0xe15   :  { %4340 = vtanh.f32 %v4935_v23 }
 0xe19   :  { %v4339_v24 = vpop.eup %4338 }
 0xe1a   :  { %1601 = vrot.lane.b32.xlu1 %v4339_v24, %s4478_s5 }
 0xe1f   :  { %v4341_v25 = vpop.eup %4340 }
 0xe20   :  { %1711 = vrot.lane.b32.xlu0 %v4341_v25, %s4478_s5 }
 0xe8c   :  { %v1602_v26 = vpop.permute.xlu1 %1601 }
 0xe8d   :  { %v1604_v27 = vmul.f32 %v4335_v12, %v1602_v26  ;;  %v4991_v12 = vpack.c.bf16 %v2189_v11, %v2188_v10 }
 0xe8f   :  { %1606 = vrot.lane.b32.xlu1 %v1604_v27, %s4479_s12 }
 0xe92   :  { %v1712_v28 = vpop.permute.xlu0 %1711 }
 0xe93   :  { %v1714_v29 = vmul.f32 %v4337_v15, %v1712_v28 }
 0xe95   :  { %1720 = vrot.lane.b32.xlu0 %v1714_v29, %s4479_s12 }
 0xf01   :  { %v1607_v30 = vpop.permute.xlu1 %1606 }
 0xf02   :  { %1610 = vst.msk [vmem:[#allocation3 + $0x18] sm:$0xff] %vm222_vm0, %v1607_v30  ;;  %3942 = vmatmul.mubr.msk.f32.vlgmr.msra.gmra.mrb[20].mxu1 %vm222_vm0, %v1607_v30 }
 0xf03   :  { %4201 = vmatpush3.bf16.msra.mxu1 %v4766_v36  ;;  %3963 = vmatprep.mubr.msk.f32.mxu1 %vm4476_vm1, %v4477_v0 }
 0xf04   :  { %4202 = vmatprep.subr.bf16.mxu1 %v4475_v38 }
 0xf07   :  { %v1721_v31 = vpop.permute.xlu0 %1720  ;;  %4204 = vmatpush3.bf16.msra.mxu1 %v4772_v39 }
 0xf08   :  { %3931 = vmatmul.mubr.msk.f32.vlgmr.msra.gmra.mrb[22].mxu0 %vm222_vm0, %v1721_v31  ;;  %4211 = vmatprep.subr.bf16.mxu1 %v4475_v38 }
 0xf09   :  { %4195 = vmatpush3.bf16.msra.mxu0 %v4668_v52  ;;  %3952 = vmatprep.mubr.msk.f32.mxu0 %vm4476_vm1, %v4477_v0 }
 0xf0a   :  { %4196 = vmatprep.subr.bf16.mxu0 %v4475_v38 }
 0xf0d   :  { %4198 = vmatpush3.bf16.msra.mxu0 %v4680_v61 }
 0xf0e   :  { %4205 = vmatprep.subr.bf16.mxu0 %v4475_v38 }
 0xf10   :  { %3953 = vmatmul.mubr.msk.f32.vlgmr.msra.gmra.mrb[24].mxu0 %vm222_vm0, %v1721_v31 }
 0xf11   :  { %4207 = vmatpush3.bf16.msra.mxu0 %v4779_v45  ;;  %3974 = vmatprep.mubr.msk.f32.mxu0 %vm4476_vm1, %v4477_v0 }
 0xf12   :  { %4208 = vmatprep.subr.bf16.mxu0 %v4475_v38 }
 0xf15   :  { %4210 = vmatpush3.bf16.msra.mxu0 %v4784_v49 }
 0xf16   :  { %4217 = vmatprep.subr.bf16.mxu0 %v4475_v38 }
 0xfd5   :  { %v1862_v52 = vpop.f32.mrb[20].mxu1 }
 0xfd6   :  { %v3943_v36 = vpop.f32.mrb[21].mxu1 }
 0xfdb   :  { %v1790_v39 = vpop.f32.mrb[22].mxu0 }
 0xfdc   :  { %v1863_v32 = vadd.f32 %v1862_v52, %v1790_v39  ;;  %v3932_v61 = vpop.f32.mrb[23].mxu0 }
 0xfde   :  { %v1866_v33 = vadd.f32 %v4807_v57, %v1863_v32 }
 0xfe0   :  { %4342 = vtanh.f32 %v1866_v33  ;;  %v3490_v43 = vmul.f32 -1.442695, %v1866_v33 }
 0xfe3   :  { %v1972_v35 = vpop.f32.mrb[24].mxu0 }
 0xfe4   :  { %v1976_v37 = vadd.f32 %v1972_v35, %v1901_v34  ;;  %v3954_v40 = vpop.f32.mrb[25].mxu0 }
 0xfe6   :  { %4344 = vtanh.f32 %v1976_v37  ;;  %v3492_v44 = vmul.f32 -1.442695, %v1976_v37 }
 0xfe7   :  { %4346 = vpow2.f32 %v3490_v43 }
 0xfe8   :  { %4348 = vpow2.f32 %v3492_v44  ;;  %v2287_v44 = vld [vmem:[%s5184_s6] sm:$0xff] }
 0xfea   :  { %v4343_v41 = vpop.eup %4342 }
 0xfeb   :  { %1876 = vrot.lane.b32.xlu1 %v4343_v41, %s4478_s5 }
 0xff0   :  { %v4345_v42 = vpop.eup %4344 }
 0xff1   :  { %1986 = vrot.lane.b32.xlu0 %v4345_v42, %s4478_s5  ;;  %v4347_v46 = vpop.eup %4346 }
 0xff2   :  { %v1870_v47 = vadd.f32 1.0, %v4347_v46  ;;  %v4349_v48 = vpop.eup %4348  ;;  %v2288_v46 = vld [vmem:[%s5184_s6 + $0x8] sm:$0xff] }
 0xff3   :  { %v1980_v50 = vadd.f32 1.0, %v4349_v48 }
 0xff4   :  { %4350 = vrcp.f32 %v1870_v47  ;;  %v4218_v47 = vpack.c.bf16 %v2288_v46, %v2287_v44  ;;  %v2755_v44 = vld [vmem:[#allocation3] sm:$0xff]  ;;  %v2756_v46 = vld [vmem:[#allocation3 + $0x8] sm:$0xff] }
 0xff5   :  { %4352 = vrcp.f32 %v1980_v50 }
 0xffe   :  { %v4351_v51 = vpop.eup %4350 }
 0xfff   :  { %v4353_v55 = vpop.eup %4352  ;;  %v1874_v59 = vmul.f32 %v4351_v51, %v4931_v20 }
0x1000   :  { %v1984_v63 = vmul.f32 %v4353_v55, %v4935_v23  ;;  %v2187_v23 = vld [vmem:[#allocation2 + $0x30] sm:$0xff] }
0x105d   :  { %v1877_v53 = vpop.permute.xlu1 %1876 }
0x105e   :  { %v1879_v54 = vmul.f32 %v4351_v51, %v1877_v53  ;;  %v2290_v53 = vld [vmem:[%s5184_s6 + $0x18] sm:$0xff] }
0x1060   :  { %1881 = vrot.lane.b32.xlu1 %v1879_v54, %s4479_s12 }
0x1063   :  { %v1987_v56 = vpop.permute.xlu0 %1986 }
0x1064   :  { %v1989_v58 = vmul.f32 %v4353_v55, %v1987_v56 }
0x1066   :  { %1991 = vrot.lane.b32.xlu0 %v1989_v58, %s4479_s12 }
0x10d2   :  { %v1882_v60 = vpop.permute.xlu1 %1881 }
0x10d3   :  { %v4970_v62 = vadd.f32 %v1882_v60, %v1874_v59 }
0x10d5   :  { %4354 = vtanh.f32 %v4970_v62 }
0x10d8   :  { %v1992_v1 = vpop.permute.xlu0 %1991 }
0x10d9   :  { %v4974_v2 = vadd.f32 %v1992_v1, %v1984_v63 }
0x10db   :  { %4356 = vtanh.f32 %v4974_v2 }
0x10df   :  { %v4355_v3 = vpop.eup %4354 }
0x10e0   :  { %1887 = vrot.lane.b32.xlu1 %v4355_v3, %s4478_s5 }
0x10e5   :  { %v4357_v4 = vpop.eup %4356 }
0x10e6   :  { %1997 = vrot.lane.b32.xlu0 %v4357_v4, %s4478_s5 }
0x1152   :  { %v1888_v5 = vpop.permute.xlu1 %1887 }
0x1153   :  { %v1890_v6 = vmul.f32 %v4351_v51, %v1888_v5  ;;  %v2289_v51 = vld [vmem:[%s5184_s6 + $0x10] sm:$0xff] }
0x1154   :  { %v4221_v54 = vpack.c.bf16 %v2290_v53, %v2289_v51 }
0x1155   :  { %1892 = vrot.lane.b32.xlu1 %v1890_v6, %s4479_s12  ;;  %v2473_v6 = vld [vmem:[#allocation2 + $0x38] sm:$0xff] }
0x1158   :  { %v1998_v8 = vpop.permute.xlu0 %1997 }
0x1159   :  { %v2000_v7 = vmul.f32 %v4353_v55, %v1998_v8 }
0x115b   :  { %2006 = vrot.lane.b32.xlu0 %v2000_v7, %s4479_s12 }
0x11c7   :  { %v1893_v9 = vpop.permute.xlu1 %1892 }
0x11c8   :  { %1896 = vst.msk [vmem:[#allocation3 + $0x20] sm:$0xff] %vm222_vm0, %v1893_v9  ;;  %3975 = vmatmul.mubr.msk.f32.vlgmr.msra.gmra.mrb[26].mxu0 %vm222_vm0, %v1893_v9 }
0x11c9   :  { %3996 = vmatprep.mubr.msk.f32.mxu0 %vm4476_vm1, %v4477_v0  ;;  %4219 = vmatpush3.bf16.msra.mxu0 %v4218_v47 }
0x11ca   :  { %4220 = vmatprep.subr.bf16.mxu0 %v4475_v38 }
0x11cd   :  { %v2007_v15 = vpop.permute.xlu0 %2006  ;;  %4222 = vmatpush3.bf16.msra.mxu0 %v4221_v54 }
0x11ce   :  { %3964 = vmatmul.mubr.msk.f32.vlgmr.msra.gmra.mrb[22].mxu1 %vm222_vm0, %v2007_v15  ;;  %4229 = vmatprep.subr.bf16.mxu0 %v4475_v38 }
0x11cf   :  { %4213 = vmatpush3.bf16.msra.mxu1 %v4991_v12  ;;  %3985 = vmatprep.mubr.msk.f32.mxu1 %vm4476_vm1, %v4477_v0 }
0x11d0   :  { %4214 = vmatprep.subr.bf16.mxu1 %v4475_v38 }
0x11d3   :  { %4216 = vmatpush3.bf16.msra.mxu1 %v5001_v16 }
0x11d4   :  { %4223 = vmatprep.subr.bf16.mxu1 %v4475_v38 }
0x11d6   :  { %3986 = vmatmul.mubr.msk.f32.vlgmr.msra.gmra.mrb[24].mxu1 %vm222_vm0, %v2007_v15 }
0x11d7   :  { %4225 = vmatpush3.bf16.msra.mxu1 %v4779_v45  ;;  %4007 = vmatprep.mubr.msk.f32.mxu1 %vm4476_vm1, %v4477_v0 }
0x11d8   :  { %4226 = vmatprep.subr.bf16.mxu1 %v4475_v38 }
0x11db   :  { %4228 = vmatpush3.bf16.msra.mxu1 %v4784_v49 }
0x11dc   :  { %4235 = vmatprep.subr.bf16.mxu1 %v4475_v38 }
0x129b   :  { %v2148_v17 = vpop.f32.mrb[26].mxu0 }
0x129c   :  { %v3976_v18 = vpop.f32.mrb[27].mxu0 }
0x12a1   :  { %v2076_v19 = vpop.f32.mrb[22].mxu1 }
0x12a2   :  { %v2149_v20 = vadd.f32 %v2148_v17, %v2076_v19  ;;  %v3965_v21 = vpop.f32.mrb[23].mxu1 }
0x12a4   :  { %v2152_v22 = vadd.f32 %v4807_v57, %v2149_v20 }
0x12a6   :  { %4358 = vtanh.f32 %v2152_v22  ;;  %v3495_v49 = vmul.f32 -1.442695, %v2152_v22 }
0x12a9   :  { %v2258_v24 = vpop.f32.mrb[24].mxu1 }
0x12aa   :  { %v2262_v45 = vadd.f32 %v2258_v24, %v2187_v23  ;;  %v3987_v25 = vpop.f32.mrb[25].mxu1 }
0x12ac   :  { %4360 = vtanh.f32 %v2262_v45  ;;  %v3497_v28 = vmul.f32 -1.442695, %v2262_v45 }
0x12ad   :  { %4362 = vpow2.f32 %v3495_v49  ;;  %v2470_v49 = vld [vmem:[#allocation4 + $0x8] sm:$0xff] }
0x12ae   :  { %4364 = vpow2.f32 %v3497_v28  ;;  %v2471_v28 = vld [vmem:[#allocation4 + $0x10] sm:$0xff] }
0x12b0   :  { %v4359_v26 = vpop.eup %4358 }
0x12b1   :  { %2162 = vrot.lane.b32.xlu1 %v4359_v26, %s4478_s5 }
0x12b6   :  { %v4361_v27 = vpop.eup %4360 }
0x12b7   :  { %2272 = vrot.lane.b32.xlu0 %v4361_v27, %s4478_s5  ;;  %v4363_v29 = vpop.eup %4362  ;;  %v2469_v27 = vld [vmem:[#allocation4] sm:$0xff] }
0x12b8   :  { %v2156_v30 = vadd.f32 1.0, %v4363_v29  ;;  %v4365_v31 = vpop.eup %4364  ;;  %v4242_v29 = vpack.c.bf16 %v2470_v49, %v2469_v27 }
0x12b9   :  { %v2266_v52 = vadd.f32 1.0, %v4365_v31 }
0x12ba   :  { %4366 = vrcp.f32 %v2156_v30  ;;  %v2472_v30 = vld [vmem:[#allocation4 + $0x18] sm:$0xff] }
0x12bb   :  { %4368 = vrcp.f32 %v2266_v52  ;;  %v4245_v31 = vpack.c.bf16 %v2472_v30, %v2471_v28 }
0x12c4   :  { %v4367_v36 = vpop.eup %4366 }
0x12c5   :  { %v4369_v61 = vpop.eup %4368  ;;  %v2160_v35 = vmul.f32 %v4367_v36, %v4970_v62 }
0x12c6   :  { %v2270_v41 = vmul.f32 %v4369_v61, %v4974_v2 }
0x1323   :  { %v2163_v39 = vpop.permute.xlu1 %2162 }
0x1324   :  { %v2165_v32 = vmul.f32 %v4367_v36, %v2163_v39  ;;  %v2763_v39 = vld [vmem:[#allocation7] sm:$0xff] }
0x1326   :  { %2167 = vrot.lane.b32.xlu1 %v2165_v32, %s4479_s12  ;;  %v2764_v32 = vld [vmem:[#allocation7 + $0x8] sm:$0xff] }
0x1329   :  { %v2273_v33 = vpop.permute.xlu0 %2272 }
0x132a   :  { %v2275_v34 = vmul.f32 %v4369_v61, %v2273_v33 }
0x132c   :  { %2277 = vrot.lane.b32.xlu0 %v2275_v34, %s4479_s12 }
0x1398   :  { %v2168_v37 = vpop.permute.xlu1 %2167 }
0x1399   :  { %v5021_v40 = vadd.f32 %v2168_v37, %v2160_v35 }
0x139b   :  { %4370 = vtanh.f32 %v5021_v40 }
0x139e   :  { %v2278_v42 = vpop.permute.xlu0 %2277 }
0x139f   :  { %v5025_v43 = vadd.f32 %v2278_v42, %v2270_v41  ;;  %v2766_v41 = vld [vmem:[#allocation7 + $0x18] sm:$0xff] }
0x13a1   :  { %4372 = vtanh.f32 %v5025_v43 }
0x13a5   :  { %v4371_v48 = vpop.eup %4370 }
0x13a6   :  { %2173 = vrot.lane.b32.xlu1 %v4371_v48, %s4478_s5  ;;  %v2758_v48 = vld [vmem:[#allocation3 + $0x18] sm:$0xff] }
0x13ab   :  { %v4373_v50 = vpop.eup %4372 }
0x13ac   :  { %2283 = vrot.lane.b32.xlu0 %v4373_v50, %s4478_s5  ;;  %v2759_v50 = vld [vmem:[#allocation3 + $0x20] sm:$0xff] }
0x1418   :  { %v2174_v55 = vpop.permute.xlu1 %2173 }
0x1419   :  { %v2176_v56 = vmul.f32 %v4367_v36, %v2174_v55 }
0x141b   :  { %2178 = vrot.lane.b32.xlu1 %v2176_v56, %s4479_s12 }
0x141e   :  { %v2284_v58 = vpop.permute.xlu0 %2283 }
0x141f   :  { %v2286_v59 = vmul.f32 %v4369_v61, %v2284_v58  ;;  %v4247_v61 = vpack.c.bf16 %v2764_v32, %v2763_v39 }
0x1421   :  { %2292 = vrot.lane.b32.xlu0 %v2286_v59, %s4479_s12 }
0x148d   :  { %v2179_v60 = vpop.permute.xlu1 %2178 }
0x148e   :  { %2182 = vst.msk [vmem:[#allocation3 + $0x28] sm:$0xff] %vm222_vm0, %v2179_v60  ;;  %4008 = vmatmul.mubr.msk.f32.vlgmr.msra.gmra.mrb[26].mxu1 %vm222_vm0, %v2179_v60  ;;  %v4480_v60 = vmov 1966171168  }
0x148f   :  { %4237 = vmatpush3.bf16.msra.mxu1 %v4218_v47  ;;  %4029 = vmatprep.mubr.msk.f32.mxu1 %vm4476_vm1, %v4477_v0  ;;  %v2757_v47 = vld [vmem:[#allocation3 + $0x10] sm:$0xff] }
0x1490   :  { %4238 = vmatprep.subr.bf16.mxu1 %v4475_v38 }
0x1493   :  { %v2293_v62 = vpop.permute.xlu0 %2292  ;;  %4240 = vmatpush3.bf16.msra.mxu1 %v4221_v54 }
0x1494   :  { %3997 = vmatmul.mubr.msk.f32.vlgmr.msra.gmra.mrb[28].mxu0 %vm222_vm0, %v2293_v62  ;;  %4248 = vmatprep.subr.bf16.mxu1 %v4247_v61 }
0x1495   :  { %4231 = vmatpush3.bf16.msra.mxu0 %v4991_v12  ;;  %4018 = vmatprep.mubr.msk.f32.mxu0 %vm4476_vm1, %v4477_v0  ;;  %v2760_v51 = vld [vmem:[#allocation3 + $0x28] sm:$0xff] }
0x1496   :  { %4232 = vmatprep.subr.bf16.mxu0 %v4475_v38 }
0x1499   :  { %4234 = vmatpush3.bf16.msra.mxu0 %v5001_v16 }
0x149a   :  { %4241 = vmatprep.subr.bf16.mxu0 %v4475_v38 }
0x149c   :  { %4019 = vmatmul.mubr.msk.f32.vlgmr.msra.gmra.mrb[30].mxu0 %vm222_vm0, %v2293_v62  ;;  %v2914_v62 = vunpack.c.l.s4 %v4480_v60 }
0x149d   :  { %4040 = vmatprep.mubr.msk.f32.mxu0 %vm4476_vm1, %v4477_v0  ;;  %4243 = vmatpush3.bf16.msra.mxu0 %v4242_v29 }
0x149e   :  { %4244 = vmatprep.subr.bf16.mxu0 %v4475_v38  ;;  %v2765_v38 = vld [vmem:[#allocation7 + $0x10] sm:$0xff] }
0x149f   :  { %v4251_v42 = vpack.c.bf16 %v2766_v41, %v2765_v38 }
0x14a1   :  { %4246 = vmatpush3.bf16.msra.mxu0 %v4245_v31 }
0x1561   :  { %v2434_v63 = vpop.f32.mrb[26].mxu1 }
0x1562   :  { %v4009_v1 = vpop.f32.mrb[27].mxu1 }
0x1563   :  { %v4398_v1 = vld [vmem:[%s5186_s8] ss:$0 sm:$0xff]  ;;  %s4481_s8 = smov [#allocation9]  }
0x1567   :  { %v2362_v2 = vpop.f32.mrb[28].mxu0 }
0x1568   :  { %v2435_v3 = vadd.f32 %v2434_v63, %v2362_v2  ;;  %v3998_v4 = vpop.f32.mrb[29].mxu0  ;;  %v2916_v63 = vlaneseq }
0x156a   :  { %v2438_v5 = vadd.f32 %v4807_v57, %v2435_v3  ;;  %v2915_v3 = vunpack.c.0.s8 %v2914_v62  ;;  %v2917_v4 = vshrl.u32 %v2916_v63, 7 }
0x156c   :  { %4374 = vtanh.f32 %v2438_v5  ;;  %v3500_v0 = vmul.f32 -1.442695, %v2438_v5  ;;  %v5095_v5 = vld [vmem:[%s5188_s10] ss:$0 sm:$0xff]  ;;  %s3444_s10 = sshll.u32 %s4481_s8, 4  ;;  %s3445_s10 = int_to_ptr.vmem [resolvable:$true] %s3444_s10 }
0x156d   :  { %p4448_p3 = scmp.lt.s32.totalorder %s3445_s10, %s3445_s10 }
0x156f   :  { %v2544_v8 = vpop.f32.mrb[30].mxu0 }
0x1570   :  { %v2548_v7 = vadd.f32 %v2544_v8, %v2473_v6  ;;  %v4020_v9 = vpop.f32.mrb[31].mxu0 }
0x1572   :  { %4376 = vtanh.f32 %v2548_v7  ;;  %v3502_v12 = vmul.f32 -1.442695, %v2548_v7  ;;  %v5098_v7 = vsub.s32 %v2915_v3, %v2917_v4 }
0x1573   :  { %4378 = vpow2.f32 %v3500_v0 }
0x1574   :  { %4380 = vpow2.f32 %v3502_v12 }
0x1576   :  { %v4375_v10 = vpop.eup %4374 }
0x1577   :  { %2448 = vrot.lane.b32.xlu0 %v4375_v10, %s4478_s5 }
0x157c   :  { %v4377_v11 = vpop.eup %4376 }
0x157d   :  { %2558 = vrot.lane.b32.xlu1 %v4377_v11, %s4478_s5  ;;  %v4379_v13 = vpop.eup %4378 }
0x157e   :  { %v2442_v14 = vadd.f32 1.0, %v4379_v13  ;;  %v4381_v15 = vpop.eup %4380 }
0x157f   :  { %v2552_v57 = vadd.f32 1.0, %v4381_v15 }
0x1580   :  { %4382 = vrcp.f32 %v2442_v14 }
0x1581   :  { %4384 = vrcp.f32 %v2552_v57 }
0x158a   :  { %v4383_v16 = vpop.eup %4382 }
0x158b   :  { %v4385_v19 = vpop.eup %4384  ;;  %v2446_v22 = vmul.f32 %v4383_v16, %v5021_v40 }
0x158c   :  { %v2556_v45 = vmul.f32 %v4385_v19, %v5025_v43 }
0x15e9   :  { %v2449_v17 = vpop.permute.xlu0 %2448 }
0x15ea   :  { %v2451_v18 = vmul.f32 %v4383_v16, %v2449_v17 }
0x15ec   :  { %2453 = vrot.lane.b32.xlu0 %v2451_v18, %s4479_s12 }
0x15ef   :  { %v2559_v20 = vpop.permute.xlu1 %2558 }
0x15f0   :  { %v2561_v21 = vmul.f32 %v4385_v19, %v2559_v20 }
0x15f2   :  { %2563 = vrot.lane.b32.xlu1 %v2561_v21, %s4479_s12 }
0x165e   :  { %v2454_v23 = vpop.permute.xlu0 %2453 }
0x165f   :  { %v5067_v24 = vadd.f32 %v2454_v23, %v2446_v22 }
0x1661   :  { %4386 = vtanh.f32 %v5067_v24 }
0x1664   :  { %v2564_v25 = vpop.permute.xlu1 %2563 }
0x1665   :  { %v2566_v26 = vadd.f32 %v2564_v25, %v2556_v45 }
0x1667   :  { %4388 = vtanh.f32 %v2566_v26 }
0x166b   :  { %v4387_v52 = vpop.eup %4386 }
0x166c   :  { %2459 = vrot.lane.b32.xlu0 %v4387_v52, %s4478_s5 }
0x1671   :  { %v4389_v36 = vpop.eup %4388 }
0x1672   :  { %2569 = vrot.lane.b32.xlu1 %v4389_v36, %s4478_s5 }
0x16de   :  { %v2460_v33 = vpop.permute.xlu0 %2459 }
0x16df   :  { %v2462_v34 = vmul.f32 %v4383_v16, %v2460_v33 }
0x16e1   :  { %2464 = vrot.lane.b32.xlu0 %v2462_v34, %s4479_s12 }
0x16e4   :  { %v2570_v35 = vpop.permute.xlu1 %2569 }
0x16e5   :  { %v2572_v37 = vmul.f32 %v4385_v19, %v2570_v35 }
0x16e7   :  { %2578 = vrot.lane.b32.xlu1 %v2572_v37, %s4479_s12 }
0x1753   :  { %v2465_v40 = vpop.permute.xlu0 %2464 }
0x1754   :  { %2468 = vst.msk [vmem:[#allocation3 + $0x30] sm:$0xff] %vm222_vm0, %v2465_v40  ;;  %4041 = vmatmul.mubr.msk.f32.vlgmr.msra.gmra.mrb[32].mxu0 %vm222_vm0, %v2465_v40 }
0x1759   :  { %v2579_v43 = vpop.permute.xlu1 %2578 }
0x175a   :  { %4030 = vmatmul.mubr.msk.f32.vlgmr.msra.gmra.mrb[28].mxu1 %vm222_vm0, %v2579_v43 }
0x175b   :  { %4250 = vmatpush3.bf16.msra.mxu1 %v4247_v61  ;;  %4051 = vmatprep.mubr.msk.f32.mxu1 %vm222_vm0, %v2755_v44  ;;  %v2761_v53 = vld [vmem:[#allocation3 + $0x30] sm:$0xff] }
0x175c   :  { %4252 = vmatprep.subr.bf16.mxu1 %v4251_v42 }
0x175f   :  { %4254 = vmatpush3.bf16.msra.mxu1 %v4251_v42 }
0x1762   :  { %4052 = vmatmul.mubr.msk.f32.vlgmr.msra.gmra.mrb[30].mxu1 %vm222_vm0, %v2756_v46 }
0x1763   :  { %4054 = vmatprep.mubr.msk.f32.mxu1 %vm222_vm0, %v2757_v47 }
0x1766   :  { %4055 = vmatmul.mubr.msk.f32.gmra.mrb[32].mxu1 %vm222_vm0, %v2758_v48 }
0x1767   :  { %4057 = vmatprep.mubr.msk.f32.mxu1 %vm222_vm0, %v2759_v50 }
0x176a   :  { %4058 = vmatmul.mubr.msk.f32.gmra.mrb[34].mxu1 %vm222_vm0, %v2760_v51 }
0x176b   :  { %4060 = vmatprep.mubr.msk.f32.mxu1 %vm222_vm0, %v2761_v53 }
0x1827   :  { %v2720_v54 = vpop.f32.mrb[32].mxu0 }
0x1828   :  { %v4042_v55 = vpop.f32.mrb[33].mxu0 }
0x182d   :  { %v2648_v56 = vpop.f32.mrb[28].mxu1 }
0x182e   :  { %v2721_v58 = vadd.f32 %v2720_v54, %v2648_v56  ;;  %v4031_v59 = vpop.f32.mrb[29].mxu1 }
0x1830   :  { %v5089_v2 = vadd.f32 %v4398_v1, %v2721_v58 }
0x1832   :  { %4390 = vtanh.f32 %v5089_v2 }
0x1835   :  { %v4053_v6 = vpop.f32.mrb[30].mxu1 }
0x1836   :  { %v2870_v8 = vadd.f32 %v4053_v6, %v5095_v5  ;;  %v2864_v9 = vpop.f32.mrb[31].mxu1 }
0x1837   :  { %v2865_v10 = vadd.f32 %v5095_v5, %v2864_v9 }
0x1838   :  { %v2904_v11 = vmax.f32 %v2870_v8, 0.0 }
0x1839   :  { %v2903_v0 = vmax.f32 %v2865_v10, 0.0  ;;  %v4056_v12 = vpop.f32.mrb[32].mxu1 }
0x183a   :  { %v2978_v13 = vcombine.high %v2904_v11, %v2904_v11  ;;  %v2985_v14 = vrot.slane %v2904_v11, %v5098_v7  ;;  %v2880_v15 = vadd.f32 %v4056_v12, %v5095_v5  ;;  %v2874_v57 = vpop.f32.mrb[33].mxu1 }
0x183b   :  { %v2912_v16 = vcombine.high %v2903_v0, %v2903_v0  ;;  %v2919_v17 = vrot.slane %v2903_v0, %v5098_v7  ;;  %v2875_v18 = vadd.f32 %v5095_v5, %v2874_v57 }
0x183c   :  { %v4391_v19 = vpop.eup %4390  ;;  %v2992_v20 = vrot.slane %v2978_v13, %v5098_v7  ;;  %v2993_v21 = vcombine.high %v2985_v14, %v2985_v14  ;;  %v3001_v22 = vrot.slane %v2985_v14, %v5098_v7  ;;  %3519 = vst.sshfl [vmem:[#allocation9 + $0x1] sm:$0x1 pattern:$0x73625140] %v2985_v14  ;;  %v2906_v23 = vmax.f32 %v2880_v15, 0.0 }
0x183d   :  { %v2926_v45 = vrot.slane %v2912_v16, %v5098_v7  ;;  %v2927_v25 = vcombine.high %v2919_v17, %v2919_v17  ;;  %v2935_v26 = vrot.slane %v2919_v17, %v5098_v7  ;;  %3515 = vst.sshfl [vmem:[#allocation9] sm:$0x1 pattern:$0x73625140] %v2919_v17  ;;  %v2905_v27 = vmax.f32 %v2875_v18, 0.0  ;;  %v4059_v49 = vpop.f32.mrb[34].mxu1  ;;  %2734 = vrot.lane.b32.xlu0 %v4391_v19, %s4478_s5 }
0x183e   :  { %v2994_v28 = vcombine.high %v2992_v20, %v2992_v20  ;;  %v3008_v29 = vrot.slane %v2992_v20, %v5098_v7  ;;  %v3015_v30 = vrot.slane %v2993_v21, %v5098_v7  ;;  %v3023_v31 = vcombine.high %v3001_v22, %v3001_v22  ;;  %3520 = vst.sshfl [vmem:[#allocation9 + $0x9] sm:$0x1 pattern:$0x73625140] %v2993_v21  ;;  %v2884_v52 = vpop.f32.mrb[35].mxu1 }
0x183f   :  { %3521 = vst.sshfl [vmem:[#allocation9 + $0x21] sm:$0x1 pattern:$0x73625140] %v2992_v20  ;;  %v2928_v36 = vcombine.high %v2926_v45, %v2926_v45  ;;  %v2942_v39 = vrot.slane %v2926_v45, %v5098_v7  ;;  %v2949_v32 = vrot.slane %v2927_v25, %v5098_v7  ;;  %v2957_v35 = vcombine.high %v2935_v26, %v2935_v26 }
0x1840   :  { %3516 = vst.sshfl [vmem:[#allocation9 + $0x8] sm:$0x1 pattern:$0x73625140] %v2927_v25  ;;  %v3022_v61 = vrot.slane %v2994_v28, %v5098_v7  ;;  %v3024_v33 = vcombine.high %v3008_v29, %v3008_v29  ;;  %v3025_v34 = vcombine.high %v3015_v30, %v3015_v30  ;;  %3037 = vst [vmem:[#allocation9 + $0x11] sm:$0x1] %v3023_v31 }
0x1841   :  { %3517 = vst.sshfl [vmem:[#allocation9 + $0x20] sm:$0x1 pattern:$0x73625140] %v2926_v45  ;;  %v2956_v37 = vrot.slane %v2928_v36, %v5098_v7  ;;  %v2958_v40 = vcombine.high %v2942_v39, %v2942_v39  ;;  %v2959_v38 = vcombine.high %v2949_v32, %v2949_v32  ;;  %2971 = vst [vmem:[#allocation9 + $0x10] sm:$0x1] %v2957_v35 }
0x1842   :  { %3522 = vst.sshfl [vmem:[#allocation9 + $0x29] sm:$0x1 pattern:$0x73625140] %v2994_v28  ;;  %v3026_v41 = vcombine.high %v3022_v61, %v3022_v61  ;;  %3038 = vst [vmem:[#allocation9 + $0x19] sm:$0x1] %v3025_v34  ;;  %v3110_v42 = vcombine.high %v2906_v23, %v2906_v23  ;;  %v3117_v43 = vrot.slane %v2906_v23, %v5098_v7 }
0x1843   :  { %3518 = vst.sshfl [vmem:[#allocation9 + $0x28] sm:$0x1 pattern:$0x73625140] %v2928_v36  ;;  %3041 = vst [vmem:[#allocation9 + $0x31] sm:$0x1] %v3024_v33  ;;  %v3044_v44 = vcombine.high %v2905_v27, %v2905_v27  ;;  %v2960_v46 = vcombine.high %v2956_v37, %v2956_v37  ;;  %v3051_v47 = vrot.slane %v2905_v27, %v5098_v7 }
0x1844   :  { %2972 = vst [vmem:[#allocation9 + $0x18] sm:$0x1] %v2959_v38  ;;  %2975 = vst [vmem:[#allocation9 + $0x30] sm:$0x1] %v2958_v40  ;;  %v2890_v48 = vadd.f32 %v4059_v49, %v5095_v5  ;;  %v2885_v50 = vadd.f32 %v5095_v5, %v2884_v52  ;;  %v3124_v51 = vrot.slane %v3110_v42, %v5098_v7  ;;  %v3505_v40 = vmul.f32 -1.442695, %v5089_v2 }
0x1845   :  { %3042 = vst [vmem:[#allocation9 + $0x39] sm:$0x1] %v3026_v41  ;;  %v3125_v53 = vcombine.high %v3117_v43, %v3117_v43  ;;  %v3133_v54 = vrot.slane %v3117_v43, %v5098_v7  ;;  %3527 = vst.sshfl [vmem:[#allocation9 + $0x3] sm:$0x1 pattern:$0x73625140] %v3117_v43  ;;  %v3058_v55 = vrot.slane %v3044_v44, %v5098_v7 }
0x1846   :  { %2976 = vst [vmem:[#allocation9 + $0x38] sm:$0x1] %v2960_v46  ;;  %v3059_v56 = vcombine.high %v3051_v47, %v3051_v47  ;;  %v3067_v58 = vrot.slane %v3051_v47, %v5098_v7  ;;  %3523 = vst.sshfl [vmem:[#allocation9 + $0x2] sm:$0x1 pattern:$0x73625140] %v3051_v47  ;;  %v3126_v62 = vcombine.high %v3124_v51, %v3124_v51  ;;  %4392 = vpow2.f32 %v3505_v40 }
0x1847   :  { %v2908_v59 = vmax.f32 %v2890_v48, 0.0  ;;  %v2907_v60 = vmax.f32 %v2885_v50, 0.0  ;;  %v3140_v63 = vrot.slane %v3124_v51, %v5098_v7  ;;  %v3147_v1 = vrot.slane %v3125_v53, %v5098_v7  ;;  %3528 = vst.sshfl [vmem:[#allocation9 + $0xb] sm:$0x1 pattern:$0x73625140] %v3125_v53 }
0x1848   :  { %v3155_v3 = vcombine.high %v3133_v54, %v3133_v54  ;;  %3529 = vst.sshfl [vmem:[#allocation9 + $0x23] sm:$0x1 pattern:$0x73625140] %v3124_v51  ;;  %v3060_v4 = vcombine.high %v3058_v55, %v3058_v55  ;;  %v3074_v6 = vrot.slane %v3058_v55, %v5098_v7  ;;  %v3081_v8 = vrot.slane %v3059_v56, %v5098_v7 }
0x1849   :  { %3525 = vst.sshfl [vmem:[#allocation9 + $0x22] sm:$0x1 pattern:$0x73625140] %v3058_v55  ;;  %v3089_v9 = vcombine.high %v3067_v58, %v3067_v58  ;;  %v3154_v10 = vrot.slane %v3126_v62, %v5098_v7  ;;  %v3156_v11 = vcombine.high %v3140_v63, %v3140_v63  ;;  %v3157_v0 = vcombine.high %v3147_v1, %v3147_v1 }
0x184a   :  { %3524 = vst.sshfl [vmem:[#allocation9 + $0xa] sm:$0x1 pattern:$0x73625140] %v3059_v56  ;;  %3169 = vst [vmem:[#allocation9 + $0x13] sm:$0x1] %v3155_v3  ;;  %v3242_v12 = vcombine.high %v2908_v59, %v2908_v59  ;;  %v3088_v13 = vrot.slane %v3060_v4, %v5098_v7  ;;  %v3090_v14 = vcombine.high %v3074_v6, %v3074_v6 }
0x184b   :  { %3530 = vst.sshfl [vmem:[#allocation9 + $0x2b] sm:$0x1 pattern:$0x73625140] %v3126_v62  ;;  %v3091_v15 = vcombine.high %v3081_v8, %v3081_v8  ;;  %3103 = vst [vmem:[#allocation9 + $0x12] sm:$0x1] %v3089_v9  ;;  %v3249_v57 = vrot.slane %v2908_v59, %v5098_v7  ;;  %v3158_v16 = vcombine.high %v3154_v10, %v3154_v10 }
0x184c   :  { %3526 = vst.sshfl [vmem:[#allocation9 + $0x2a] sm:$0x1 pattern:$0x73625140] %v3060_v4  ;;  %3170 = vst [vmem:[#allocation9 + $0x1b] sm:$0x1] %v3157_v0  ;;  %v3256_v17 = vrot.slane %v3242_v12, %v5098_v7  ;;  %v3176_v18 = vcombine.high %v2907_v60, %v2907_v60  ;;  %v3183_v19 = vrot.slane %v2907_v60, %v5098_v7 }
0x184d   :  { %3173 = vst [vmem:[#allocation9 + $0x33] sm:$0x1] %v3156_v11  ;;  %v3092_v20 = vcombine.high %v3088_v13, %v3088_v13  ;;  %3104 = vst [vmem:[#allocation9 + $0x1a] sm:$0x1] %v3091_v15  ;;  %v3257_v21 = vcombine.high %v3249_v57, %v3249_v57  ;;  %v3265_v22 = vrot.slane %v3249_v57, %v5098_v7 }
0x184e   :  { %3107 = vst [vmem:[#allocation9 + $0x32] sm:$0x1] %v3090_v14  ;;  %3535 = vst.sshfl [vmem:[#allocation9 + $0x5] sm:$0x1 pattern:$0x73625140] %v3249_v57  ;;  %v3258_v23 = vcombine.high %v3256_v17, %v3256_v17  ;;  %v3272_v45 = vrot.slane %v3256_v17, %v5098_v7  ;;  %v3190_v25 = vrot.slane %v3176_v18, %v5098_v7 }
0x184f   :  { %3174 = vst [vmem:[#allocation9 + $0x3b] sm:$0x1] %v3158_v16  ;;  %3537 = vst.sshfl [vmem:[#allocation9 + $0x25] sm:$0x1 pattern:$0x73625140] %v3256_v17  ;;  %v3191_v26 = vcombine.high %v3183_v19, %v3183_v19  ;;  %v3279_v27 = vrot.slane %v3257_v21, %v5098_v7  ;;  %v3287_v49 = vcombine.high %v3265_v22, %v3265_v22 }
0x1850   :  { %3531 = vst.sshfl [vmem:[#allocation9 + $0x4] sm:$0x1 pattern:$0x73625140] %v3183_v19  ;;  %3108 = vst [vmem:[#allocation9 + $0x3a] sm:$0x1] %v3092_v20  ;;  %v3199_v28 = vrot.slane %v3183_v19, %v5098_v7  ;;  %v3286_v29 = vrot.slane %v3258_v23, %v5098_v7  ;;  %v3288_v30 = vcombine.high %v3272_v45, %v3272_v45  ;;  %v4393_v38 = vpop.eup %4392 }
0x1851   :  { %3536 = vst.sshfl [vmem:[#allocation9 + $0xd] sm:$0x1 pattern:$0x73625140] %v3257_v21  ;;  %v3192_v31 = vcombine.high %v3190_v25, %v3190_v25  ;;  %v3206_v52 = vrot.slane %v3190_v25, %v5098_v7  ;;  %v3289_v36 = vcombine.high %v3279_v27, %v3279_v27  ;;  %3301 = vst [vmem:[#allocation9 + $0x15] sm:$0x1] %v3287_v49 }
0x1852   :  { %3538 = vst.sshfl [vmem:[#allocation9 + $0x2d] sm:$0x1 pattern:$0x73625140] %v3258_v23  ;;  %v3213_v39 = vrot.slane %v3191_v26, %v5098_v7  ;;  %v3221_v32 = vcombine.high %v3199_v28, %v3199_v28  ;;  %v3290_v61 = vcombine.high %v3286_v29, %v3286_v29  ;;  %3305 = vst [vmem:[#allocation9 + $0x35] sm:$0x1] %v3288_v30 }
0x1853   :  { %3532 = vst.sshfl [vmem:[#allocation9 + $0xc] sm:$0x1 pattern:$0x73625140] %v3191_v26  ;;  %v3220_v33 = vrot.slane %v3192_v31, %v5098_v7  ;;  %v3222_v34 = vcombine.high %v3206_v52, %v3206_v52  ;;  %3302 = vst [vmem:[#allocation9 + $0x1d] sm:$0x1] %v3289_v36 }
0x1854   :  { %3533 = vst.sshfl [vmem:[#allocation9 + $0x24] sm:$0x1 pattern:$0x73625140] %v3190_v25  ;;  %v3223_v35 = vcombine.high %v3213_v39, %v3213_v39  ;;  %3235 = vst [vmem:[#allocation9 + $0x14] sm:$0x1] %v3221_v32 }
0x1855   :  { %3534 = vst.sshfl [vmem:[#allocation9 + $0x2c] sm:$0x1 pattern:$0x73625140] %v3192_v31  ;;  %3306 = vst [vmem:[#allocation9 + $0x3d] sm:$0x1] %v3290_v61  ;;  %v3224_v37 = vcombine.high %v3220_v33, %v3220_v33 }
0x1856   :  { %3239 = vst [vmem:[#allocation9 + $0x34] sm:$0x1] %v3222_v34  ;;  %3236 = vst [vmem:[#allocation9 + $0x1c] sm:$0x1] %v3223_v35  ;;  %v2728_v41 = vadd.f32 1.0, %v4393_v38 }
0x1857   :  { %3240 = vst [vmem:[#allocation9 + $0x3c] sm:$0x1] %v3224_v37 }
0x1858   :  { %4394 = vrcp.f32 %v2728_v41 }
0x1862   :  { %v4395_v42 = vpop.eup %4394 }
0x1863   :  { %v2732_v46 = vmul.f32 %v4395_v42, %v5067_v24 }
0x18af   :  { %v2735_v43 = vpop.permute.xlu0 %2734 }
0x18b0   :  { %v2737_v44 = vmul.f32 %v4395_v42, %v2735_v43 }
0x18b2   :  { %2739 = vrot.lane.b32.xlu1 %v2737_v44, %s4479_s12 }
0x1924   :  { %v2740_v47 = vpop.permute.xlu1 %2739 }
0x1925   :  { %v2742_v48 = vadd.f32 %v2740_v47, %v2732_v46 }
0x1927   :  { %4396 = vtanh.f32 %v2742_v48 }
0x1931   :  { %v4397_v50 = vpop.eup %4396 }
0x1932   :  { %2745 = vrot.lane.b32.xlu0 %v4397_v50, %s4478_s5  ;;  %s4443_s5 = scalar_lea.vmem %s3445_s10, 1024 }
0x1933   :  { %p4444_p2 = scmp.ne.s32.totalorder %s3445_s10, %s4443_s5  ;;  %p4449_p4 = scmp.lt.s32.totalorder %s4443_s5, %s4443_s5 }
0x1935   :  { %p4450_p5 = por %p4449_p4, %p4448_p3 }
0x1937   :  { %p4451_p6 = pnand %p4450_p5, %p4444_p2 }
0x19a4   :  { %v2746_v51 = vpop.permute.xlu0 %2745 }
0x19a5   :  { %v2748_v53 = vmul.f32 %v4395_v42, %v2746_v51 }
0x19a7   :  { %2750 = vrot.lane.b32.xlu1 %v2748_v53, %s4479_s12 }
0x1a19   :  { %v2751_v2 = vpop.permute.xlu1 %2750 }
0x1a1a   :  { %2754 = vst.msk [vmem:[#allocation3 + $0x38] sm:$0xff] %vm222_vm0, %v2751_v2 }
0x1a21   :  { %v2762_v54 = vld [vmem:[#allocation3 + $0x38] sm:$0xff] }
0x1a22   :  { %4061 = vmatmul.mubr.msk.f32.gmra.mrb[36].mxu1 %vm222_vm0, %v2762_v54 }
0x1af5   :  { %v4062_v55 = vpop.f32.mrb[36].mxu1 }
0x1af6   :  { %v2900_v56 = vadd.f32 %v4062_v55, %v5095_v5  ;;  %v2894_v24 = vpop.f32.mrb[37].mxu1 }
0x1af7   :  { %v2895_v58 = vadd.f32 %v5095_v5, %v2894_v24 }
0x1af8   :  { %v2910_v59 = vmax.f32 %v2900_v56, 0.0 }
0x1af9   :  { %v2909_v60 = vmax.f32 %v2895_v58, 0.0 }
0x1afa   :  { %v3374_v62 = vcombine.high %v2910_v59, %v2910_v59  ;;  %v3381_v63 = vrot.slane %v2910_v59, %v5098_v7 }
0x1afb   :  { %v3308_v1 = vcombine.high %v2909_v60, %v2909_v60  ;;  %v3315_v3 = vrot.slane %v2909_v60, %v5098_v7 }
0x1afc   :  { %v3388_v4 = vrot.slane %v3374_v62, %v5098_v7  ;;  %v3389_v6 = vcombine.high %v3381_v63, %v3381_v63  ;;  %v3397_v8 = vrot.slane %v3381_v63, %v5098_v7  ;;  %3543 = vst.sshfl [vmem:[#allocation9 + $0x7] sm:$0x1 pattern:$0x73625140] %v3381_v63 }
0x1afd   :  { %v3322_v9 = vrot.slane %v3308_v1, %v5098_v7  ;;  %v3323_v10 = vcombine.high %v3315_v3, %v3315_v3  ;;  %v3331_v11 = vrot.slane %v3315_v3, %v5098_v7  ;;  %3539 = vst.sshfl [vmem:[#allocation9 + $0x6] sm:$0x1 pattern:$0x73625140] %v3315_v3 }
0x1afe   :  { %v3390_v5 = vcombine.high %v3388_v4, %v3388_v4  ;;  %v3404_v0 = vrot.slane %v3388_v4, %v5098_v7  ;;  %v3411_v12 = vrot.slane %v3389_v6, %v5098_v7  ;;  %v3419_v13 = vcombine.high %v3397_v8, %v3397_v8  ;;  %3544 = vst.sshfl [vmem:[#allocation9 + $0xf] sm:$0x1 pattern:$0x73625140] %v3389_v6 }
0x1aff   :  { %3545 = vst.sshfl [vmem:[#allocation9 + $0x27] sm:$0x1 pattern:$0x73625140] %v3388_v4  ;;  %v3324_v14 = vcombine.high %v3322_v9, %v3322_v9  ;;  %v3338_v15 = vrot.slane %v3322_v9, %v5098_v7  ;;  %v3345_v57 = vrot.slane %v3323_v10, %v5098_v7  ;;  %v3353_v16 = vcombine.high %v3331_v11, %v3331_v11 }
0x1b00   :  { %3540 = vst.sshfl [vmem:[#allocation9 + $0xe] sm:$0x1 pattern:$0x73625140] %v3323_v10  ;;  %v3418_v17 = vrot.slane %v3390_v5, %v5098_v7  ;;  %v3420_v18 = vcombine.high %v3404_v0, %v3404_v0  ;;  %v3421_v19 = vcombine.high %v3411_v12, %v3411_v12  ;;  %3433 = vst [vmem:[#allocation9 + $0x17] sm:$0x1] %v3419_v13 }
0x1b01   :  { %3541 = vst.sshfl [vmem:[#allocation9 + $0x26] sm:$0x1 pattern:$0x73625140] %v3322_v9  ;;  %v3352_v20 = vrot.slane %v3324_v14, %v5098_v7  ;;  %v3354_v21 = vcombine.high %v3338_v15, %v3338_v15  ;;  %v3355_v22 = vcombine.high %v3345_v57, %v3345_v57  ;;  %3367 = vst [vmem:[#allocation9 + $0x16] sm:$0x1] %v3353_v16 }
0x1b02   :  { %3546 = vst.sshfl [vmem:[#allocation9 + $0x2f] sm:$0x1 pattern:$0x73625140] %v3390_v5  ;;  %v3422_v23 = vcombine.high %v3418_v17, %v3418_v17  ;;  %3434 = vst [vmem:[#allocation9 + $0x1f] sm:$0x1] %v3421_v19 }
0x1b03   :  { %3542 = vst.sshfl [vmem:[#allocation9 + $0x2e] sm:$0x1 pattern:$0x73625140] %v3324_v14  ;;  %3437 = vst [vmem:[#allocation9 + $0x37] sm:$0x1] %v3420_v18  ;;  %v3356_v45 = vcombine.high %v3352_v20, %v3352_v20 }
0x1b04   :  { %3368 = vst [vmem:[#allocation9 + $0x1e] sm:$0x1] %v3355_v22  ;;  %3371 = vst [vmem:[#allocation9 + $0x36] sm:$0x1] %v3354_v21 }
0x1b05   :  { %3438 = vst [vmem:[#allocation9 + $0x3f] sm:$0x1] %v3422_v23  ;;  %3372 = vst [vmem:[#allocation9 + $0x3e] sm:$0x1] %v3356_v45 }
0x1b06   :  { %4454 = shalt.err (!%p4451_p6)
}
0x1b07   :  { %s4455_s20 = scalar_lea.hbm %s5189_s11, 1024 }
0x1b08   :  { %p4456_p7 = scmp.ne.s32.totalorder %s5189_s11, %s4455_s20  ;;  %p4459_p8 = scmp.lt.u32.totalorder %s4455_s20, %s5189_s11 }
0x1b0a   :  { %p4461_p9 = pnand %p4459_p8, %p4456_p7 }
0x1b0c   :  { %4464 = shalt.err (!%p4461_p9)
}
0x1b0d   :  { %3450 = dma.vmem_to_hbm [thread:$0]  %s3445_s10, 1024, %s5189_s11, [#allocation6], %s4472_s27, %s4472_s27, %s4473_s28  }
0x1b0e   :  { %4469 = dma.done.wait [#allocation6], 1024  }
0x1b0f   :  { %4470 = vsyncadd [#allocation6], 4294966272 }
0x1b10   :  { %3454 = vsyncpa [#allocation5], 1 }
0x1b11   :  { %3455 = vsyncpa [#allocation8], 1 }
0x1b12   :  { %3456 = vsyncpa [#allocation6], 1 }

</bundles_post_ra>
